<compile_context>
chip_gen: v7x
topology: tpu7x:2x2x1
jax: 0.10.0
libtpu: 0.0.40
codegen_flags: <defaults>
</compile_context>

<pallas_src>
import functools

import jax
import jax.numpy as jnp
import numpy as np
from jax.experimental import pallas as pl
from jax.experimental.pallas import tpu as pltpu


def mmoe_kernel(h_ref, ew_ref, eb_ref, gw_ref, gb_ref, v_ref, c_ref, out_ref,
                *, n_task, n_expert):
    """One batch-tile of the full MMOE forward (eval mode, BN + towers folded)."""
    h = h_ref[...]                                           # [BB, Dp]  (bf16)

    # ---- all experts in ONE MXU push: h @ [Dp, E*H], bias + ReLU once ----
    eo = jnp.dot(h, ew_ref[...], preferred_element_type=jnp.float32)
    eo = jnp.maximum(eo + eb_ref[...], 0.0)                  # [BB, E*H] f32

    # ---- all gates in ONE MXU push: h @ [Dp, T*E] ----
    logits = jnp.dot(h, gw_ref[...], preferred_element_type=jnp.float32)
    logits = logits + gb_ref[...]                            # [BB, T*E] f32

    # ---- folded towers for all (expert, task) pairs in ONE MXU push ----
    # z[:, t*E+e] = (expert e output) @ v_t
    z = jnp.dot(eo, v_ref[...], preferred_element_type=jnp.float32)   # [BB, T*E]

    ys = []
    for t in range(n_task):
        sl = slice(t * n_expert, (t + 1) * n_expert)
        lg = logits[:, sl]                                   # [BB, E]
        m = jnp.max(lg, axis=-1, keepdims=True)
        ex = jnp.exp(lg - m)
        # EUP approximate reciprocal for the softmax denominator (free slot)
        gate = ex * pl.reciprocal(jnp.sum(ex, axis=-1, keepdims=True), approx=True)
        # y_t = sum_e gate[t,e] * z[:, t*E+e]  (output_size == 1)
        # TODO(synk): output_size > 1 needs a [E*H, T*E*O] projection layout.
        ys.append(jnp.sum(gate * z[:, sl], axis=-1, keepdims=True))

    # single lane-dense store: task axis last, one vst per tile
    out_ref[...] = (jnp.concatenate(ys, axis=-1) + c_ref[...]).astype(out_ref.dtype)


def mmoe_forward(h, params, *, block_b=None):
    """Run the Pallas MMOE kernel. h is the (padded, bf16) feature matrix."""
    B, Dp = h.shape
    T, E, O = params["n_task"], params["n_expert"], params["out_size"]

    # Batch tile: multiple of 128 here (prod: >=128 v5e, >=256 v6e/v7x) with
    # >=2 grid steps per TensorCore so the per-core pipeline overlaps DMA.
    BB = block_b or B
    assert B % BB == 0, "pad the batch to a multiple of the batch tile"
    grid = (B // BB,)

    def rep(arr):
        # Whole-array block with a constant index_map: single-buffer it so its
        # VMEM footprint is not doubled for zero overlap benefit.
        shape = arr.shape
        return pl.BlockSpec(shape, lambda *_, _n=len(shape): (0,) * _n,
                            pipeline_mode=pl.Buffered(1))

    in_specs = [
        pl.BlockSpec((BB, Dp), lambda i: (i, 0)),   # h: tiled, double-buffered
        rep(params["ew"]), rep(params["eb"]),       # fused expert w / b
        rep(params["gw"]), rep(params["gb"]),       # fused gate w / b
        rep(params["v"]), rep(params["c"]),         # folded tower proj / bias
    ]
    out_specs = pl.BlockSpec((BB, T * O), lambda i: (i, 0))

    # VMEM budget derived from actual sizes: 2x h tile (bf16) + 2x out tile
    # (f32) + 1x weights (single-buffered) + f32 intermediates (eo, logits, z).
    # Clamped to <=48 MiB so the sizing also holds on v7x's 64 MiB/TC; on
    # v5e/v6e (128 MiB) raise the cap if a larger production tile is wanted.
    weight_names = ("ew", "eb", "gw", "gb", "v", "c")
    weight_bytes = sum(int(params[k].size) * params[k].dtype.itemsize
                       for k in weight_names)
    io_bytes = 2 * BB * Dp * 2 + 2 * BB * T * O * 4
    interm_bytes = BB * (params["ew"].shape[1] + 2 * T * E) * 4
    est = weight_bytes + io_bytes + interm_bytes
    vmem_limit = int(min(48 * 1024 * 1024, max(16 * 1024 * 1024, 2 * est)))

    out = pl.pallas_call(
        functools.partial(mmoe_kernel, n_task=T, n_expert=E),
        grid=grid,
        in_specs=in_specs,
        out_specs=out_specs,
        out_shape=jax.ShapeDtypeStruct((B, T * O), jnp.float32),
        compiler_params=pltpu.CompilerParams(
            dimension_semantics=("parallel",),
            vmem_limit_bytes=vmem_limit),
    )(h, params["ew"], params["eb"], params["gw"], params["gb"],
      params["v"], params["c"])
    # split the lane-dense [B, T*O] result back into per-task outputs
    return [out[:, t * O:(t + 1) * O] for t in range(T)]


def repack_params(raw, *, d_pad, eps=1e-5, matmul_dtype=jnp.bfloat16):
    """Host-side, one-time parameter transform into the kernel layout."""
    experts = raw["experts"]                 # [D, H, E]
    D, H, E = experts.shape
    T = raw["gates"].shape[0]
    O = raw["W3"].shape[2]
    assert O == 1, "TODO(synk): output_size > 1 needs a [E*H, T*E*O] projection"
    assert d_pad >= D and d_pad % 16 == 0    # bf16 sublane pack (16), not 8

    def pad_d(w):                            # zero-pad the contraction axis
        return jnp.pad(w, ((0, d_pad - D),) + ((0, 0),) * (w.ndim - 1))

    # fuse experts -> [D, E*H]; gates -> [D, T*E]
    ew = pad_d(jnp.transpose(experts, (0, 2, 1)).reshape(D, E * H))
    eb = jnp.transpose(raw["experts_bias"], (1, 0)).reshape(1, E * H)
    gw = pad_d(jnp.transpose(raw["gates"], (1, 0, 2)).reshape(D, T * E))
    gb = raw["gates_bias"].reshape(1, T * E)

    # fold eval-mode BatchNorm1d into the preceding Linear
    s1 = raw["G1"] / jnp.sqrt(raw["V1"] + eps)                    # [T, H1]
    w1 = raw["W1"] * s1[:, None, :]
    b1 = (raw["B1"] - raw["M1"]) * s1 + raw["Be1"]
    s2 = raw["G2"] / jnp.sqrt(raw["V2"] + eps)                    # [T, H2]
    w2 = raw["W2"] * s2[:, None, :]
    b2 = (raw["B2"] - raw["M2"]) * s2 + raw["Be2"]

    # fold the activation-free tower into a single projection + bias per task:
    #   v_t = W1'_t @ W2'_t @ W3_t                          [H, O]
    #   c_t = b1'_t @ W2'_t @ W3_t + b2'_t @ W3_t + B3_t    [O]
    v = jnp.einsum("thi,tij,tjo->tho", w1, w2, raw["W3"])         # [T, H, O]
    c = (jnp.einsum("ti,tij,tjo->to", b1, w2, raw["W3"])
         + jnp.einsum("tj,tjo->to", b2, raw["W3"])
         + raw["B3"])                                             # [T, O]

    # block-structured projection so Z = eo @ V is one MXU push:
    # column t*E+e holds v_t in rows e*H:(e+1)*H, zeros elsewhere.
    V = jnp.zeros((E * H, T * E), jnp.float32)
    for t in range(T):
        for e in range(E):
            V = V.at[e * H:(e + 1) * H, t * E + e].set(v[t, :, 0])

    # TODO(synk): at production sizes store V in bf16 (fp8 ew/gw on v7x); kept
    # f32 here so the small-shape correctness check keeps tight margins.
    return dict(
        ew=ew.astype(matmul_dtype), eb=eb.astype(jnp.float32),
        gw=gw.astype(matmul_dtype), gb=gb.astype(jnp.float32),
        v=V.astype(jnp.float32), c=c.reshape(1, T * O).astype(jnp.float32),
        n_task=T, n_expert=E, out_size=O,
    )


def reference_forward(h, raw, eps=1e-5):
    """Pure-JAX reference matching the PyTorch forward (eval mode).

    Structure is PyTorch-faithful (unfused experts, per-task gates, UNfolded
    BatchNorm, UNfolded towers), so it independently validates the kernel's
    fusion + BN fold + tower fold.  It mirrors only the kernel's storage
    precision: h / expert / gate weights are rounded to bf16; all arithmetic
    stays f32 (precision=HIGHEST).
    """
    hp = jax.lax.Precision.HIGHEST
    q = lambda a: a.astype(jnp.bfloat16).astype(jnp.float32)
    hq = q(h)
    eo = jnp.einsum("ij,jkl->ikl", hq, q(raw["experts"]), precision=hp)
    eo = jnp.maximum(eo + raw["experts_bias"], 0.0)
    outs = []
    for t in range(raw["gates"].shape[0]):
        g = jnp.dot(hq, q(raw["gates"][t]), precision=hp) + raw["gates_bias"][t]
        g = jax.nn.softmax(g, axis=-1)
        x = jnp.sum(eo * g[:, None, :], axis=2)
        x = jnp.dot(x, raw["W1"][t], precision=hp) + raw["B1"][t]
        x = (x - raw["M1"][t]) / jnp.sqrt(raw["V1"][t] + eps) * raw["G1"][t] + raw["Be1"][t]
        x = jnp.dot(x, raw["W2"][t], precision=hp) + raw["B2"][t]
        x = (x - raw["M2"][t]) / jnp.sqrt(raw["V2"][t] + eps) * raw["G2"][t] + raw["Be2"][t]
        x = jnp.dot(x, raw["W3"][t], precision=hp) + raw["B3"][t]
        outs.append(x)
    return outs


if __name__ == "__main__":
    # ---- config (small shapes; batch sized so grid=(4,) => >=2 steps per TC) ----
    B, EMB, SESS = 512, 16, 8
    N_EXPERT, MMOE_H, HIDDEN, OUT_SIZE, N_TASK = 2, 32, [32, 32], 1, 2
    user_feature_dict = {"user_id": (100, 0), "user_age": (1, 1)}
    item_feature_dict = {"item_id": (50, 2), "item_price": (1, 3)}
    hidden_size = EMB * 2 + 1 + 1          # 2 categorical embeddings + 2 scalars
    D = hidden_size + SESS                 # session embedding concatenated in forward
    DP = ((D + 15) // 16) * 16             # bf16 sublane-aligned padded feature dim
    BB = 128                               # batch tile -> grid=(4,)

    keys = iter(jax.random.split(jax.random.PRNGKey(0), 64))
    nk = lambda: next(keys)

    # ---- deterministic parameters ----
    emb_user_id = jax.random.normal(nk(), (100, EMB), jnp.float32) * 0.1
    emb_item_id = jax.random.normal(nk(), (50, EMB), jnp.float32) * 0.1

    experts = jax.random.normal(nk(), (D, MMOE_H, N_EXPERT), jnp.float32)
    experts_bias = jax.random.uniform(nk(), (MMOE_H, N_EXPERT), jnp.float32)
    gates = jax.random.normal(nk(), (N_TASK, D, N_EXPERT), jnp.float32)
    gates_bias = jax.random.uniform(nk(), (N_TASK, N_EXPERT), jnp.float32)

    H1, H2 = HIDDEN
    bnd1 = 1.0 / np.sqrt(MMOE_H)
    bnd2 = 1.0 / np.sqrt(H1)
    bnd3 = 1.0 / np.sqrt(H2)
    W1 = jax.random.uniform(nk(), (N_TASK, MMOE_H, H1), jnp.float32, -bnd1, bnd1)
    B1 = jax.random.uniform(nk(), (N_TASK, H1), jnp.float32, -bnd1, bnd1)
    G1 = jax.random.uniform(nk(), (N_TASK, H1), jnp.float32, 0.5, 1.5)
    Be1 = jax.random.normal(nk(), (N_TASK, H1), jnp.float32) * 0.1
    M1 = jax.random.normal(nk(), (N_TASK, H1), jnp.float32) * 0.1
    V1 = jax.random.uniform(nk(), (N_TASK, H1), jnp.float32, 0.5, 1.5)
    W2 = jax.random.uniform(nk(), (N_TASK, H1, H2), jnp.float32, -bnd2, bnd2)
    B2 = jax.random.uniform(nk(), (N_TASK, H2), jnp.float32, -bnd2, bnd2)
    G2 = jax.random.uniform(nk(), (N_TASK, H2), jnp.float32, 0.5, 1.5)
    Be2 = jax.random.normal(nk(), (N_TASK, H2), jnp.float32) * 0.1
    M2 = jax.random.normal(nk(), (N_TASK, H2), jnp.float32) * 0.1
    V2 = jax.random.uniform(nk(), (N_TASK, H2), jnp.float32, 0.5, 1.5)
    W3 = jax.random.uniform(nk(), (N_TASK, H2, OUT_SIZE), jnp.float32, -bnd3, bnd3)
    B3 = jax.random.uniform(nk(), (N_TASK, OUT_SIZE), jnp.float32, -bnd3, bnd3)

    # ---- example inputs ----
    uid = jax.random.randint(nk(), (B,), 0, 100).astype(jnp.float32)
    age = jax.random.normal(nk(), (B,), jnp.float32)
    iid = jax.random.randint(nk(), (B,), 0, 50).astype(jnp.float32)
    price = jax.random.normal(nk(), (B,), jnp.float32)
    x = jnp.stack([uid, age, iid, price], axis=1)                    # [B, 4]
    session_embedding = jax.random.normal(nk(), (B, SESS), jnp.float32)

    # ---- glue: embedding lookups + concatenation (mirrors the PyTorch forward) ----
    user_embed = jnp.concatenate(
        [jnp.take(emb_user_id, x[:, 0].astype(jnp.int32), axis=0), x[:, 1:2]], axis=1)
    item_embed = jnp.concatenate(
        [jnp.take(emb_item_id, x[:, 2].astype(jnp.int32), axis=0), x[:, 3:4]], axis=1)
    hidden = jnp.concatenate([user_embed, item_embed], axis=1).astype(jnp.float32)
    h = jnp.concatenate([hidden, session_embedding], axis=1)         # [B, D]

    # ---- repack params (fuse experts/gates, fold BN + towers, bf16 operands) ----
    raw = dict(experts=experts, experts_bias=experts_bias, gates=gates,
               gates_bias=gates_bias, W1=W1, B1=B1, G1=G1, Be1=Be1, M1=M1, V1=V1,
               W2=W2, B2=B2, G2=G2, Be2=Be2, M2=M2, V2=V2, W3=W3, B3=B3)
    params = repack_params(raw, d_pad=DP)
    h_pad = jnp.pad(h, ((0, 0), (0, DP - D))).astype(jnp.bfloat16)   # [B, DP] bf16

    task_outputs = mmoe_forward(h_pad, params, block_b=BB)
    task_outputs = [jax.block_until_ready(o) for o in task_outputs]

    # ---- correctness check against pure-JAX reference (eval-mode semantics) ----
    ref = reference_forward(h, raw)
    for got, want in zip(task_outputs, ref):
        np.testing.assert_allclose(np.asarray(got), np.asarray(want),
                                   rtol=2e-2, atol=2e-2)

    print("KERNEL_OK")
</pallas_src>

<mosaic_0001>
module attributes {stable_mosaic.version = 11 : i64} {
  func.func @mmoe_kernel(%arg0: i32, %arg1: memref<128x48xbf16, #tpu.memory_space<vmem>>, %arg2: memref<48x64xbf16, #tpu.memory_space<vmem>>, %arg3: memref<1x64xf32, #tpu.memory_space<vmem>>, %arg4: memref<48x4xbf16, #tpu.memory_space<vmem>>, %arg5: memref<1x4xf32, #tpu.memory_space<vmem>>, %arg6: memref<64x4xf32, #tpu.memory_space<vmem>>, %arg7: memref<1x2xf32, #tpu.memory_space<vmem>>, %arg8: memref<128x2xf32, #tpu.memory_space<vmem>>) attributes {dimension_semantics = [#tpu.dimension_semantics<parallel>], iteration_bounds = array<i64: 4>, scalar_prefetch = 0 : i64, scratch_operands = 0 : i64, tpu.core_type = #tpu.core_type<tc>, window_params = [{transform_indices = @transform_0, window_bounds = array<i64: 128, 48>}, {pipeline_mode = #tpu.pipeline_mode<synchronous>, transform_indices = @transform_1, window_bounds = array<i64: 48, 64>}, {pipeline_mode = #tpu.pipeline_mode<synchronous>, transform_indices = @transform_2, window_bounds = array<i64: 1, 64>}, {pipeline_mode = #tpu.pipeline_mode<synchronous>, transform_indices = @transform_3, window_bounds = array<i64: 48, 4>}, {pipeline_mode = #tpu.pipeline_mode<synchronous>, transform_indices = @transform_4, window_bounds = array<i64: 1, 4>}, {pipeline_mode = #tpu.pipeline_mode<synchronous>, transform_indices = @transform_5, window_bounds = array<i64: 64, 4>}, {pipeline_mode = #tpu.pipeline_mode<synchronous>, transform_indices = @transform_6, window_bounds = array<i64: 1, 2>}, {transform_indices = @transform_7, window_bounds = array<i64: 128, 2>}]} {
    %c0 = arith.constant 0 : index
    %c0_0 = arith.constant 0 : index
    %0 = vector.load %arg1[%c0, %c0_0] : memref<128x48xbf16, #tpu.memory_space<vmem>>, vector<128x48xbf16>
    %c0_1 = arith.constant 0 : index
    %c0_2 = arith.constant 0 : index
    %1 = vector.load %arg2[%c0_1, %c0_2] : memref<48x64xbf16, #tpu.memory_space<vmem>>, vector<48x64xbf16>
    %cst = arith.constant dense<0.000000e+00> : vector<128x64xf32>
    %2 = tpu.matmul %0, %1, %cst {dimension_numbers = #tpu.dot_dimension_numbers<[1], [0], [0], [1], [0, 0, 1, 1], [], []>} : vector<128x48xbf16>, vector<48x64xbf16>, vector<128x64xf32> -> vector<128x64xf32>
    %c0_3 = arith.constant 0 : index
    %c0_4 = arith.constant 0 : index
    %3 = vector.load %arg3[%c0_3, %c0_4] : memref<1x64xf32, #tpu.memory_space<vmem>>, vector<1x64xf32>
    %4 = vector.broadcast %3 : vector<1x64xf32> to vector<128x64xf32>
    %5 = arith.addf %2, %4 : vector<128x64xf32>
    %cst_5 = arith.constant 0.000000e+00 : f32
    %6 = vector.broadcast %cst_5 : f32 to vector<128x64xf32>
    %7 = arith.maximumf %5, %6 : vector<128x64xf32>
    %c0_6 = arith.constant 0 : index
    %c0_7 = arith.constant 0 : index
    %8 = vector.load %arg4[%c0_6, %c0_7] : memref<48x4xbf16, #tpu.memory_space<vmem>>, vector<48x4xbf16>
    %cst_8 = arith.constant dense<0.000000e+00> : vector<128x4xf32>
    %9 = tpu.matmul %0, %8, %cst_8 {dimension_numbers = #tpu.dot_dimension_numbers<[1], [0], [0], [1], [0, 0, 1, 1], [], []>} : vector<128x48xbf16>, vector<48x4xbf16>, vector<128x4xf32> -> vector<128x4xf32>
    %c0_9 = arith.constant 0 : index
    %c0_10 = arith.constant 0 : index
    %10 = vector.load %arg5[%c0_9, %c0_10] : memref<1x4xf32, #tpu.memory_space<vmem>>, vector<1x4xf32>
    %11 = vector.broadcast %10 : vector<1x4xf32> to vector<128x4xf32>
    %12 = arith.addf %9, %11 : vector<128x4xf32>
    %c0_11 = arith.constant 0 : index
    %c0_12 = arith.constant 0 : index
    %13 = vector.load %arg6[%c0_11, %c0_12] : memref<64x4xf32, #tpu.memory_space<vmem>>, vector<64x4xf32>
    %cst_13 = arith.constant dense<0.000000e+00> : vector<128x4xf32>
    %14 = tpu.matmul %7, %13, %cst_13 {dimension_numbers = #tpu.dot_dimension_numbers<[1], [0], [0], [1], [0, 0, 1, 1], [], []>} : vector<128x64xf32>, vector<64x4xf32>, vector<128x4xf32> -> vector<128x4xf32>
    %15 = vector.extract_strided_slice %12 {offsets = [0, 0], sizes = [128, 2], strides = [1, 1]} : vector<128x4xf32> to vector<128x2xf32>
    %cst_14 = arith.constant dense<0xFF800000> : vector<128xf32>
    %16 = vector.multi_reduction <maximumf>, %15, %cst_14 [1] : vector<128x2xf32> to vector<128xf32>
    %17 = vector.shape_cast %16 : vector<128xf32> to vector<128x1xf32>
    %18 = vector.broadcast %17 : vector<128x1xf32> to vector<128x2xf32>
    %19 = arith.subf %15, %18 : vector<128x2xf32>
    %20 = math.exp %19 : vector<128x2xf32>
    %cst_15 = arith.constant dense<0.000000e+00> : vector<128xf32>
    %21 = vector.multi_reduction <add>, %20, %cst_15 [1] : vector<128x2xf32> to vector<128xf32>
    %22 = vector.shape_cast %21 : vector<128xf32> to vector<128x1xf32>
    %23 = tpu.reciprocal %22 {approx = true} : vector<128x1xf32> -> vector<128x1xf32>
    %24 = vector.broadcast %23 : vector<128x1xf32> to vector<128x2xf32>
    %25 = arith.mulf %20, %24 : vector<128x2xf32>
    %26 = vector.extract_strided_slice %14 {offsets = [0, 0], sizes = [128, 2], strides = [1, 1]} : vector<128x4xf32> to vector<128x2xf32>
    %27 = arith.mulf %25, %26 : vector<128x2xf32>
    %cst_16 = arith.constant dense<0.000000e+00> : vector<128xf32>
    %28 = vector.multi_reduction <add>, %27, %cst_16 [1] : vector<128x2xf32> to vector<128xf32>
    %29 = vector.shape_cast %28 : vector<128xf32> to vector<128x1xf32>
    %30 = vector.extract_strided_slice %12 {offsets = [0, 2], sizes = [128, 2], strides = [1, 1]} : vector<128x4xf32> to vector<128x2xf32>
    %cst_17 = arith.constant dense<0xFF800000> : vector<128xf32>
    %31 = vector.multi_reduction <maximumf>, %30, %cst_17 [1] : vector<128x2xf32> to vector<128xf32>
    %32 = vector.shape_cast %31 : vector<128xf32> to vector<128x1xf32>
    %33 = vector.broadcast %32 : vector<128x1xf32> to vector<128x2xf32>
    %34 = arith.subf %30, %33 : vector<128x2xf32>
    %35 = math.exp %34 : vector<128x2xf32>
    %cst_18 = arith.constant dense<0.000000e+00> : vector<128xf32>
    %36 = vector.multi_reduction <add>, %35, %cst_18 [1] : vector<128x2xf32> to vector<128xf32>
    %37 = vector.shape_cast %36 : vector<128xf32> to vector<128x1xf32>
    %38 = tpu.reciprocal %37 {approx = true} : vector<128x1xf32> -> vector<128x1xf32>
    %39 = vector.broadcast %38 : vector<128x1xf32> to vector<128x2xf32>
    %40 = arith.mulf %35, %39 : vector<128x2xf32>
    %41 = vector.extract_strided_slice %14 {offsets = [0, 2], sizes = [128, 2], strides = [1, 1]} : vector<128x4xf32> to vector<128x2xf32>
    %42 = arith.mulf %40, %41 : vector<128x2xf32>
    %cst_19 = arith.constant dense<0.000000e+00> : vector<128xf32>
    %43 = vector.multi_reduction <add>, %42, %cst_19 [1] : vector<128x2xf32> to vector<128xf32>
    %44 = vector.shape_cast %43 : vector<128xf32> to vector<128x1xf32>
    %45 = tpu.concatenate %29, %44 in 1 : vector<128x1xf32>, vector<128x1xf32> -> vector<128x2xf32>
    %c0_20 = arith.constant 0 : index
    %c0_21 = arith.constant 0 : index
    %46 = vector.load %arg7[%c0_20, %c0_21] : memref<1x2xf32, #tpu.memory_space<vmem>>, vector<1x2xf32>
    %47 = vector.broadcast %46 : vector<1x2xf32> to vector<128x2xf32>
    %48 = arith.addf %45, %47 : vector<128x2xf32>
    %c0_22 = arith.constant 0 : index
    %c0_23 = arith.constant 0 : index
    %49 = vector.load %arg8[%c0_22, %c0_23] : memref<128x2xf32, #tpu.memory_space<vmem>>, vector<128x2xf32>
    tpu.vector_store %arg8[%c0_22, %c0_23], %48 {strides = array<i32>} : memref<128x2xf32, #tpu.memory_space<vmem>>, vector<128x2xf32>,
    return
  }
  func.func @transform_0(%arg0: i32) -> (i32, i32) {
    %c0_i32 = arith.constant 0 : i32
    %c0_i32_0 = arith.constant 0 : i32
    return %arg0, %c0_i32 : i32, i32
  }
  func.func @transform_1(%arg0: i32) -> (i32, i32) {
    %c0_i32 = arith.constant 0 : i32
    %c0_i32_0 = arith.constant 0 : i32
    %c0_i32_1 = arith.constant 0 : i32
    return %c0_i32, %c0_i32_0 : i32, i32
  }
  func.func @transform_2(%arg0: i32) -> (i32, i32) {
    %c0_i32 = arith.constant 0 : i32
    %c0_i32_0 = arith.constant 0 : i32
    %c0_i32_1 = arith.constant 0 : i32
    return %c0_i32, %c0_i32_0 : i32, i32
  }
  func.func @transform_3(%arg0: i32) -> (i32, i32) {
    %c0_i32 = arith.constant 0 : i32
    %c0_i32_0 = arith.constant 0 : i32
    %c0_i32_1 = arith.constant 0 : i32
    return %c0_i32, %c0_i32_0 : i32, i32
  }
  func.func @transform_4(%arg0: i32) -> (i32, i32) {
    %c0_i32 = arith.constant 0 : i32
    %c0_i32_0 = arith.constant 0 : i32
    %c0_i32_1 = arith.constant 0 : i32
    return %c0_i32, %c0_i32_0 : i32, i32
  }
  func.func @transform_5(%arg0: i32) -> (i32, i32) {
    %c0_i32 = arith.constant 0 : i32
    %c0_i32_0 = arith.constant 0 : i32
    %c0_i32_1 = arith.constant 0 : i32
    return %c0_i32, %c0_i32_0 : i32, i32
  }
  func.func @transform_6(%arg0: i32) -> (i32, i32) {
    %c0_i32 = arith.constant 0 : i32
    %c0_i32_0 = arith.constant 0 : i32
    %c0_i32_1 = arith.constant 0 : i32
    return %c0_i32, %c0_i32_0 : i32, i32
  }
  func.func @transform_7(%arg0: i32) -> (i32, i32) {
    %c0_i32 = arith.constant 0 : i32
    %c0_i32_0 = arith.constant 0 : i32
    return %arg0, %c0_i32 : i32, i32
  }
}

</mosaic_0001>

<bundles_post_ra>
// kernel: tpu_custom_call.1
= control target key start
LH: loop header
LB: loop body
LE: loop exit
PB: predicated region body
PF: predicated region fallthrough
CT: control target
= control target key end

     0   :  { %s1972_s24 = smov 0   ;;  %s2684_s0 = inlined_call_operand.vmem [shape: bf16[512,48], index: 0, kind: input, shape index: {}]   ;;  %s2685_s1 = inlined_call_operand.vmem [shape: bf16[48,64], index: 1, kind: input, shape index: {}]   ;;  %s2686_s2 = inlined_call_operand.vmem [shape: f32[1,64], index: 2, kind: input, shape index: {}]   ;;  %s2687_s3 = inlined_call_operand.vmem [shape: bf16[48,4], index: 3, kind: input, shape index: {}]   ;;  %s2688_s4 = inlined_call_operand.vmem [shape: f32[1,4], index: 4, kind: input, shape index: {}]   ;;  %s2689_s5 = inlined_call_operand.vmem [shape: f32[64,4], index: 5, kind: input, shape index: {}]   ;;  %s2690_s6 = inlined_call_operand.vmem [shape: f32[1,2], index: 6, kind: input, shape index: {}]   ;;  %s2691_s7 = inlined_call_operand.vmem [shape: f32[512,2], index: 7, kind: output, shape index: {}]  }
   0x1 LB: > { %s1560_s25 = sadd.s32 4294967295, %s1929_s24   ;;  %p1564_p0 = scmp.ge.s32.totalorder %s1929_s24, 1  ;;  %s1929_s24 = sphi %s1972_s24, %s17_s24  }
   0x2   : > { %p238_p1 = scmp.lt.s32.totalorder %s1929_s24, 5 }
   0x4   : > { %p239_p2 = pnand %p1564_p0, %p238_p1 }
   0x6   : > { %242 = sbr.rel (%p239_p2) target bundleno = 1110 (0x456), region = 48 }
   0xd   : > { %v1781_v0 = vld [vmem:[%s2685_s1] sm:$0xff]   ;;  %s1565_s28 = sshll.u32 %s1560_s25, 4  ;;  %v1782_v1 = vld [vmem:[%s2685_s1 + $0x8] sm:$0xff]   ;;  %v1783_v2 = vld [vmem:[%s2685_s1 + $0x10] sm:$0xff]   ;;  %vm370_vm0 = vcmask 392192   ;;  %vm644_vm1 = vcmask 523264  }
   0xe   : > { %p271_p3 = scmp.lt.s32.totalorder %s1565_s28, 63  ;;  %1666 = vmatprep.subr.bf16.mxu0 %v1781_v0  ;;  %1766 = vmatprep.subr.bf16.mxu1 %v1781_v0  ;;  %v1788_v3 = vld [vmem:[%s2687_s3] sm:$0xff]   ;;  %v637_v5 = vld [vmem:[%s2689_s5 + $0x8] sm:$0xff]  ;;  %v638_v14 = vld [vmem:[%s2689_s5 + $0x10] sm:$0xff]  ;;  %vm1079_vm2 = vcmask 31760   ;;  %vm838_vm3 = vcmask 15360  }
   0xf   : > { %1667 = vmatpush3.bf16.msra.mxu0 %v1781_v0  ;;  %1769 = vmatpush3.bf16.msra.mxu1 %v1781_v0  ;;  %v636_v4 = vld [vmem:[%s2689_s5] sm:$0xff]  ;;  %v1789_v11 = vld [vmem:[%s2687_s3 + $0x8] sm:$0xff]   ;;  %v639_v15 = vld [vmem:[%s2689_s5 + $0x18] sm:$0xff]  ;;  %s1931_s19 = smov 126   ;;  %vm1448_vm4 = vcmask 7168  }
  0x10   : > { %s2696_s28 = smov (!%p271_p3, %s1565_s28), 63  ;;  %1668 = vmatprep.subr.bf16.mxu0 %v1782_v1  ;;  %1767 = vmatprep.subr.bf16.mxu1 %v1782_v1  ;;  %v1750_v8 = vpack.c.bf16 %v637_v5, %v636_v4  ;;  %v1794_v16 = vld [vmem:[%s2687_s3 + $0x10] sm:$0xff]   ;;  %v1754_v17 = vpack.c.bf16 %v639_v15, %v638_v14  ;;  %v640_v20 = vld [vmem:[%s2689_s5 + $0x20] sm:$0xff]  ;;  %v641_v21 = vld [vmem:[%s2689_s5 + $0x28] sm:$0xff] }
  0x11   : > { %s1566_s10 = sshll.u32 %s2696_s28, 2  ;;  %v1758_v22 = vpack.c.bf16 %v641_v21, %v640_v20  ;;  %v642_v23 = vld [vmem:[%s2689_s5 + $0x30] sm:$0xff]  ;;  %v643_v24 = vld [vmem:[%s2689_s5 + $0x38] sm:$0xff]  ;;  %v2057_v27 = vld [vmem:[%s2686_s2] ss:$0 sm:$0xff]  ;;  %s1568_s20 = sshll.u32 %s2696_s28, 3 }
  0x12   : > { %s1995_s13 = scalar_lea.vmem %s2684_s0, %s1566_s10  ;;  %v1762_v25 = vpack.c.bf16 %v643_v24, %v642_v23  ;;  %v2075_v58 = vld [vmem:[%s2688_s4] ss:$0 sm:$0xff]  ;;  %s2603_s26 = scalar_lea.vmem %s2691_s7, %s1568_s20 }
  0x13   : > { %1669 = vmatpush3.bf16.msra.mxu0 %v1782_v1  ;;  %1770 = vmatpush3.bf16.msra.mxu1 %v1782_v1  ;;  %v1784_v6 = vld [vmem:[%s1995_s13] sm:$0xff]   ;;  %v1786_v9 = vld [vmem:[%s1995_s13 + $0x8] sm:$0xff]   ;;  %v1790_v12 = vld [vmem:[%s1995_s13 + $0x10] sm:$0xff]  }
  0x14   : > { %1670 = vmatprep.subr.bf16.mxu0 %v1783_v2  ;;  %1768 = vmatprep.subr.bf16.mxu1 %v1783_v2  ;;  %v1785_v7 = vld [vmem:[%s1995_s13 + $0x20] sm:$0xff]   ;;  %v1787_v10 = vld [vmem:[%s1995_s13 + $0x28] sm:$0xff]   ;;  %v1791_v13 = vld [vmem:[%s1995_s13 + $0x30] sm:$0xff]  }
  0x15   : > { %1672 = vmatprep.mubr.msk.bf16.mxu0 %vm370_vm0, %v1784_v6  ;;  %1680 = vmatprep.mubr.msk.bf16.mxu1 %vm370_vm0, %v1785_v7  ;;  %v1792_v18 = vld [vmem:[%s1995_s13 + $0x18] sm:$0xff]  }
  0x16   : > { %v1793_v19 = vld [vmem:[%s1995_s13 + $0x38] sm:$0xff]  }
  0x17   : > { %1671 = vmatpush3.bf16.msra.mxu0 %v1783_v2  ;;  %1771 = vmatpush3.bf16.msra.mxu1 %v1783_v2 }
  0x18   : > { %1688 = vmatprep.subr.bf16.mxu1 %v1788_v3  ;;  %1751 = vmatprep.subr.bf16.mxu0 %v1750_v8 }
  0x1a   : > { %1673 = vmatmul.mubr.msk.bf16.vlgmr.msra.gmra.mrb[0].mxu0 %vm370_vm0, %v1786_v9  ;;  %1681 = vmatmul.mubr.msk.bf16.vlgmr.msra.gmra.mrb[0].mxu1 %vm370_vm0, %v1787_v10 }
  0x1b   : > { %1689 = vmatpush3.bf16.msra.mxu1 %v1788_v3  ;;  %1676 = vmatprep.mubr.msk.bf16.mxu0 %vm370_vm0, %v1790_v12 }
  0x1c   : > { %1690 = vmatprep.subr.bf16.mxu1 %v1789_v11  ;;  %1684 = vmatprep.mubr.msk.bf16.mxu1 %vm370_vm0, %v1791_v13 }
  0x1d   : > { %1753 = vmatpush3.bf16.msra.mxu0 %v1750_v8 }
  0x1e   : > { %1755 = vmatprep.subr.bf16.mxu0 %v1754_v17 }
  0x1f   : > { %1691 = vmatpush3.bf16.msra.mxu1 %v1789_v11 }
  0x20   : > { %1692 = vmatprep.subr.bf16.mxu1 %v1794_v16 }
  0x21   : > { %1757 = vmatpush3.bf16.msra.mxu0 %v1754_v17 }
  0x22   : > { %1677 = vmatmul.mubr.msk.bf16.gmra.mrb[4].mxu0 %vm370_vm0, %v1792_v18  ;;  %1685 = vmatmul.mubr.msk.bf16.gmra.mrb[4].mxu1 %vm370_vm0, %v1793_v19 }
  0x23   : > { %1693 = vmatpush3.bf16.msra.mxu1 %v1794_v16  ;;  %1694 = vmatprep.mubr.msk.bf16.mxu1 %vm370_vm0, %v1784_v6 }
  0x24   : > { %1759 = vmatprep.subr.bf16.mxu0 %v1758_v22 }
  0x25   : > { %1761 = vmatpush3.bf16.msra.mxu0 %v1758_v22 }
  0x26   : > { %1763 = vmatprep.subr.bf16.mxu0 %v1762_v25 }
  0x29   : > { %1765 = vmatpush3.bf16.msra.mxu0 %v1762_v25 }
  0x2a   : > { %1695 = vmatmul.mubr.msk.bf16.vlgmr.msra.gmra.mrb[8].mxu1 %vm370_vm0, %v1786_v9 }
  0x2b   : > { %1698 = vmatprep.mubr.msk.bf16.mxu1 %vm370_vm0, %v1790_v12 }
  0x32   : > { %1699 = vmatmul.mubr.msk.bf16.gmra.mrb[12].mxu1 %vm370_vm0, %v1792_v18 }
  0x33   : > { %1702 = vmatprep.mubr.msk.bf16.mxu1 %vm370_vm0, %v1785_v7 }
  0x3a   : > { %1703 = vmatmul.mubr.msk.bf16.gmra.mrb[16].mxu1 %vm370_vm0, %v1787_v10 }
  0x3b   : > { %1706 = vmatprep.mubr.msk.bf16.mxu1 %vm370_vm0, %v1791_v13 }
  0x42   : > { %1707 = vmatmul.mubr.msk.bf16.gmra.mrb[20].mxu1 %vm370_vm0, %v1793_v19 }
  0xed   : > { %v1674_v26 = vpop.f32.mrb[0].mxu0  ;;  %v1682_v28 = vpop.f32.mrb[0].mxu1 }
  0xee   : > { %v438_v29 = vadd.f32 %v1674_v26, %v2057_v27  ;;  %v429_v30 = vpop.f32.mrb[1].mxu0  ;;  %v461_v31 = vpop.f32.mrb[1].mxu1  ;;  %v470_v7 = vadd.f32 %v1682_v28, %v2057_v27 }
  0xef   : > { %v430_v32 = vadd.f32 %v2057_v27, %v429_v30  ;;  %v1675_v33 = vpop.f32.mrb[2].mxu0  ;;  %v1683_v34 = vpop.f32.mrb[2].mxu1  ;;  %v462_v59 = vadd.f32 %v2057_v27, %v461_v31 }
  0xf0   : > { %v432_v35 = vpop.f32.mrb[3].mxu0  ;;  %v464_v36 = vpop.f32.mrb[3].mxu1  ;;  %v441_v38 = vadd.f32 %v1675_v33, %v2057_v27  ;;  %v494_v40 = vmax.f32 %v438_v29, 0.0  ;;  %v473_v9 = vadd.f32 %v1683_v34, %v2057_v27  ;;  %v502_v14 = vmax.f32 %v470_v7, 0.0 }
  0xf1   : > { %v492_v37 = vmax.f32 %v430_v32, 0.0  ;;  %v433_v39 = vadd.f32 %v2057_v27, %v432_v35  ;;  %v465_v0 = vadd.f32 %v2057_v27, %v464_v36  ;;  %v500_v8 = vmax.f32 %v462_v59, 0.0 }
  0xf2   : > { %v495_v42 = vmax.f32 %v441_v38, 0.0  ;;  %v503_v18 = vmax.f32 %v473_v9, 0.0 }
  0xf3   : > { %v493_v41 = vmax.f32 %v433_v39, 0.0  ;;  %1726 = vmatprep.mubr.msk.f32.mxu0 %vm644_vm1, %v492_v37  ;;  %v501_v10 = vmax.f32 %v465_v0, 0.0 }
  0xf5   : > { %v1678_v43 = vpop.f32.mrb[4].mxu0  ;;  %v1686_v44 = vpop.f32.mrb[4].mxu1  ;;  %1727 = vmatmul.mubr.msk.f32.vlgmr.msra.gmra.mrb[8].mxu0 %vm644_vm1, %v493_v41 }
  0xf6   : > { %v454_v45 = vadd.f32 %v1678_v43, %v2057_v27  ;;  %v445_v46 = vpop.f32.mrb[5].mxu0  ;;  %v477_v47 = vpop.f32.mrb[5].mxu1  ;;  %1729 = vmatprep.mubr.msk.f32.mxu0 %vm644_vm1, %v494_v40  ;;  %v486_v25 = vadd.f32 %v1686_v44, %v2057_v27 }
  0xf7   : > { %v446_v48 = vadd.f32 %v2057_v27, %v445_v46  ;;  %v1679_v49 = vpop.f32.mrb[6].mxu0  ;;  %v1687_v50 = vpop.f32.mrb[6].mxu1  ;;  %v478_v15 = vadd.f32 %v2057_v27, %v477_v47 }
  0xf8   : > { %v448_v51 = vpop.f32.mrb[7].mxu0  ;;  %v480_v52 = vpop.f32.mrb[7].mxu1  ;;  %v498_v55 = vmax.f32 %v454_v45, 0.0  ;;  %v457_v56 = vadd.f32 %v1679_v49, %v2057_v27  ;;  %v489_v29 = vadd.f32 %v1687_v50, %v2057_v27  ;;  %v506_v32 = vmax.f32 %v486_v25, 0.0 }
  0xf9   : > { %v496_v53 = vmax.f32 %v446_v48, 0.0  ;;  %v449_v54 = vadd.f32 %v2057_v27, %v448_v51  ;;  %1730 = vmatmul.mubr.msk.f32.gmra.mrb[10].mxu0 %vm644_vm1, %v495_v42  ;;  %v481_v20 = vadd.f32 %v2057_v27, %v480_v52  ;;  %v504_v26 = vmax.f32 %v478_v15, 0.0 }
  0xfa   : > { %v499_v61 = vmax.f32 %v457_v56, 0.0  ;;  %v507_v38 = vmax.f32 %v489_v29, 0.0 }
  0xfb   : > { %v497_v57 = vmax.f32 %v449_v54, 0.0  ;;  %1732 = vmatprep.mubr.msk.f32.mxu0 %vm644_vm1, %v496_v53  ;;  %v505_v30 = vmax.f32 %v481_v20, 0.0 }
  0xfd   : > { %v1696_v60 = vpop.f32.mrb[8].mxu1  ;;  %1733 = vmatmul.mubr.msk.f32.gmra.mrb[12].mxu0 %vm644_vm1, %v497_v57 }
  0xfe   : > { %v2080_v62 = vadd.f32 %v1696_v60, %v2075_v58  ;;  %v573_v63 = vpop.f32.mrb[9].mxu1  ;;  %1735 = vmatprep.mubr.msk.f32.mxu0 %vm644_vm1, %v498_v55 }
  0xff   : > { %v1697_v1 = vpop.f32.mrb[10].mxu1  ;;  %v2085_v2 = vadd.f32 %v2075_v58, %v573_v63 }
 0x100   : > { %v2088_v3 = vadd.f32 %v1697_v1, %v2075_v58  ;;  %v576_v4 = vpop.f32.mrb[11].mxu1  ;;  %v1086_v5 = vsel %vm1079_vm2, %v2080_v62, -inf  ;;  %v845_v6 = vsel %vm838_vm3, %v2080_v62, -inf }
 0x101   : > { %1087 = vmax.xlane.f32.xlu1 %v1086_v5  ;;  %846 = vmax.xlane.f32.xlu0 %v845_v6  ;;  %v2099_v11 = vadd.f32 %v2075_v58, %v576_v4  ;;  %v1080_v13 = vsel %vm1079_vm2, %v2085_v2, -inf  ;;  %v839_v23 = vsel %vm838_vm3, %v2085_v2, -inf }
 0x102   : > { %1736 = vmatmul.mubr.msk.f32.gmra.mrb[14].mxu0 %vm644_vm1, %v499_v61  ;;  %v1089_v12 = vsel %vm1079_vm2, %v2088_v3, -inf  ;;  %v848_v31 = vsel %vm838_vm3, %v2088_v3, -inf }
 0x103   : > { %1738 = vmatprep.mubr.msk.f32.mxu0 %vm644_vm1, %v500_v8  ;;  %v842_v22 = vsel %vm838_vm3, %v2099_v11, -inf  ;;  %v1083_v39 = vsel %vm1079_vm2, %v2099_v11, -inf }
 0x105   : > { %1090 = vmax.xlane.f32.xlu1 %v1089_v12  ;;  %1081 = vmax.xlane.f32.xlu0 %v1080_v13  ;;  %v1700_v16 = vpop.f32.mrb[12].mxu1 }
 0x106   : > { %1739 = vmatmul.mubr.msk.f32.gmra.mrb[16].mxu0 %vm644_vm1, %v501_v10  ;;  %v589_v17 = vpop.f32.mrb[13].mxu1  ;;  %v2125_v34 = vadd.f32 %v1700_v16, %v2075_v58 }
 0x107   : > { %1741 = vmatprep.mubr.msk.f32.mxu0 %vm644_vm1, %v502_v14  ;;  %v1701_v19 = vpop.f32.mrb[14].mxu1  ;;  %v2142_v44 = vadd.f32 %v2075_v58, %v589_v17 }
 0x108   : > { %v2110_v21 = vadd.f32 %v1701_v19, %v2075_v58  ;;  %v592_v24 = vpop.f32.mrb[15].mxu1  ;;  %v1098_v42 = vsel %vm1079_vm2, %v2125_v34, -inf  ;;  %v857_v47 = vsel %vm838_vm3, %v2125_v34, -inf }
 0x109   : > { %843 = vmax.xlane.f32.xlu1 %v842_v22  ;;  %840 = vmax.xlane.f32.xlu0 %v839_v23  ;;  %v2129_v35 = vadd.f32 %v2075_v58, %v592_v24  ;;  %v1092_v52 = vsel %vm1079_vm2, %v2142_v44, -inf  ;;  %v851_v56 = vsel %vm838_vm3, %v2142_v44, -inf }
 0x10a   : > { %1742 = vmatmul.mubr.msk.f32.gmra.mrb[18].mxu0 %vm644_vm1, %v503_v18  ;;  %v1101_v28 = vsel %vm1079_vm2, %v2110_v21, -inf  ;;  %v860_v36 = vsel %vm838_vm3, %v2110_v21, -inf }
 0x10b   : > { %1744 = vmatprep.mubr.msk.f32.mxu0 %vm644_vm1, %v504_v26  ;;  %v1095_v41 = vsel %vm1079_vm2, %v2129_v35, -inf  ;;  %v854_v46 = vsel %vm838_vm3, %v2129_v35, -inf }
 0x10d   : > { %1102 = vmax.xlane.f32.xlu1 %v1101_v28  ;;  %849 = vmax.xlane.f32.xlu0 %v848_v31  ;;  %v1704_v33 = vpop.f32.mrb[16].mxu1 }
 0x10e   : > { %1745 = vmatmul.mubr.msk.f32.gmra.mrb[20].mxu0 %vm644_vm1, %v505_v30  ;;  %v605_v27 = vpop.f32.mrb[17].mxu1  ;;  %v2156_v53 = vadd.f32 %v1704_v33, %v2075_v58 }
 0x10f   : > { %1747 = vmatprep.mubr.msk.f32.mxu0 %vm644_vm1, %v506_v32  ;;  %v1705_v37 = vpop.f32.mrb[18].mxu1  ;;  %v2170_v60 = vadd.f32 %v2075_v58, %v605_v27 }
 0x110   : > { %v608_v40 = vpop.f32.mrb[19].mxu1  ;;  %v2145_v45 = vadd.f32 %v1705_v37, %v2075_v58  ;;  %v1110_v59 = vsel %vm1079_vm2, %v2156_v53, -inf  ;;  %v869_v0 = vsel %vm838_vm3, %v2156_v53, -inf }
 0x111   : > { %861 = vmax.xlane.f32.xlu1 %v860_v36  ;;  %1084 = vmax.xlane.f32.xlu0 %v1083_v39  ;;  %v2159_v54 = vadd.f32 %v2075_v58, %v608_v40  ;;  %v1104_v4 = vsel %vm1079_vm2, %v2170_v60, -inf  ;;  %v863_v8 = vsel %vm838_vm3, %v2170_v60, -inf }
 0x112   : > { %1748 = vmatmul.mubr.msk.f32.gmra.mrb[22].mxu0 %vm644_vm1, %v507_v38  ;;  %v1113_v51 = vsel %vm1079_vm2, %v2145_v45, -inf  ;;  %v872_v55 = vsel %vm838_vm3, %v2145_v45, -inf }
 0x113   : > { %v1107_v57 = vsel %vm1079_vm2, %v2159_v54, -inf  ;;  %v866_v63 = vsel %vm838_vm3, %v2159_v54, -inf }
 0x115   : > { %1096 = vmax.xlane.f32.xlu1 %v1095_v41  ;;  %1099 = vmax.xlane.f32.xlu0 %v1098_v42  ;;  %v1708_v43 = vpop.f32.mrb[20].mxu1 }
 0x116   : > { %v621_v48 = vpop.f32.mrb[21].mxu1  ;;  %v2184_v5 = vadd.f32 %v1708_v43, %v2075_v58 }
 0x117   : > { %v1709_v49 = vpop.f32.mrb[22].mxu1  ;;  %v2198_v12 = vadd.f32 %v2075_v58, %v621_v48 }
 0x118   : > { %v624_v50 = vpop.f32.mrb[23].mxu1  ;;  %v2173_v61 = vadd.f32 %v1709_v49, %v2075_v58  ;;  %v1122_v10 = vsel %vm1079_vm2, %v2184_v5, -inf  ;;  %v881_v14 = vsel %vm838_vm3, %v2184_v5, -inf }
 0x119   : > { %855 = vmax.xlane.f32.xlu1 %v854_v46  ;;  %858 = vmax.xlane.f32.xlu0 %v857_v47  ;;  %v2187_v6 = vadd.f32 %v2075_v58, %v624_v50  ;;  %v1116_v15 = vsel %vm1079_vm2, %v2198_v12, -inf  ;;  %v875_v16 = vsel %vm838_vm3, %v2198_v12, -inf }
 0x11a   : > { %v1125_v1 = vsel %vm1079_vm2, %v2173_v61, -inf  ;;  %v884_v7 = vsel %vm838_vm3, %v2173_v61, -inf }
 0x11b   : > { %v1119_v9 = vsel %vm1079_vm2, %v2187_v6, -inf  ;;  %v878_v13 = vsel %vm838_vm3, %v2187_v6, -inf }
 0x11d   : > { %1114 = vmax.xlane.f32.xlu1 %v1113_v51  ;;  %1093 = vmax.xlane.f32.xlu0 %v1092_v52 }
 0x121   : > { %873 = vmax.xlane.f32.xlu1 %v872_v55  ;;  %852 = vmax.xlane.f32.xlu0 %v851_v56 }
 0x125   : > { %1108 = vmax.xlane.f32.xlu1 %v1107_v57  ;;  %1111 = vmax.xlane.f32.xlu0 %v1110_v59 }
 0x129   : > { %867 = vmax.xlane.f32.xlu1 %v866_v63  ;;  %870 = vmax.xlane.f32.xlu0 %v869_v0 }
 0x12d   : > { %1126 = vmax.xlane.f32.xlu1 %v1125_v1  ;;  %1105 = vmax.xlane.f32.xlu0 %v1104_v4 }
 0x131   : > { %885 = vmax.xlane.f32.xlu1 %v884_v7  ;;  %864 = vmax.xlane.f32.xlu0 %v863_v8 }
 0x135   : > { %1120 = vmax.xlane.f32.xlu1 %v1119_v9  ;;  %1123 = vmax.xlane.f32.xlu0 %v1122_v10 }
 0x139   : > { %879 = vmax.xlane.f32.xlu1 %v878_v13  ;;  %882 = vmax.xlane.f32.xlu0 %v881_v14 }
 0x13d   : > { %1117 = vmax.xlane.f32.xlu0 %v1116_v15 }
 0x141   : > { %876 = vmax.xlane.f32.xlu0 %v875_v16 }
 0x18e   : > { %v1088_v17 = vpop.xlane.xlu1 %1087  ;;  %v847_v18 = vpop.xlane.xlu0 %846 }
 0x18f   : > { %v1130_v58 = vsub.f32 %v2080_v62, %v1088_v17  ;;  %v889_v37 = vsub.f32 %v2080_v62, %v847_v18 }
 0x191   : > { %v1148_v19 = vmul.f32 1.442695, %v1130_v58  ;;  %v907_v39 = vmul.f32 1.442695, %v889_v37 }
 0x192   : > { %v1091_v20 = vpop.xlane.xlu1 %1090  ;;  %v1082_v22 = vpop.xlane.xlu0 %1081 }
 0x193   : > { %1795 = vpow2.f32 %v1148_v19  ;;  %v1131_v23 = vsub.f32 %v2088_v3, %v1091_v20  ;;  %v1128_v24 = vsub.f32 %v2085_v2, %v1082_v22 }
 0x195   : > { %v1150_v25 = vmul.f32 1.442695, %v1131_v23  ;;  %v1144_v26 = vmul.f32 1.442695, %v1128_v24 }
 0x196   : > { %v841_v28 = vpop.xlane.xlu0 %840  ;;  %v844_v46 = vpop.xlane.xlu1 %843 }
 0x197   : > { %1797 = vpow2.f32 %v1150_v25  ;;  %v887_v40 = vsub.f32 %v2085_v2, %v841_v28  ;;  %v888_v48 = vsub.f32 %v2099_v11, %v844_v46 }
 0x198   : > { %1799 = vpow2.f32 %v1144_v26 }
 0x199   : > { %v903_v41 = vmul.f32 1.442695, %v887_v40  ;;  %v905_v2 = vmul.f32 1.442695, %v888_v48 }
 0x19a   : > { %v850_v29 = vpop.xlane.xlu0 %849  ;;  %v1103_v56 = vpop.xlane.xlu1 %1102 }
 0x19b   : > { %v890_v42 = vsub.f32 %v2088_v3, %v850_v29  ;;  %v1135_v15 = vsub.f32 %v2110_v21, %v1103_v56 }
 0x19d   : > { %v2211_v30 = vpop.eup %1795  ;;  %v909_v62 = vmul.f32 1.442695, %v890_v42  ;;  %v1158_v19 = vmul.f32 1.442695, %v1135_v15 }
 0x19e   : > { %1196 = vrot.lane.b32.xlu1 %v2211_v30, %s1931_s19  ;;  %v1085_v31 = vpop.xlane.xlu0 %1084  ;;  %v2252_v7 = vpop.xlane.xlu1 %861 }
 0x19f   : > { %v1129_v32 = vsub.f32 %v2099_v11, %v1085_v31 }
 0x1a1   : > { %v2216_v33 = vpop.eup %1797  ;;  %v1146_v36 = vmul.f32 1.442695, %v1129_v32 }
 0x1a2   : > { %v2218_v27 = vpop.eup %1799  ;;  %1198 = vrot.lane.b32.xlu1 %v2216_v33, %s1931_s19  ;;  %v1100_v47 = vpop.xlane.xlu0 %1099 }
 0x1a3   : > { %1192 = vrot.lane.b32.xlu0 %v2218_v27, %s1931_s19  ;;  %1801 = vpow2.f32 %v1146_v36  ;;  %v1134_v55 = vsub.f32 %v2125_v34, %v1100_v47  ;;  %v1097_v17 = vpop.xlane.xlu1 %1096 }
 0x1a4   : > { %1803 = vpow2.f32 %v907_v39  ;;  %v1133_v20 = vsub.f32 %v2129_v35, %v1097_v17 }
 0x1a5   : > { %1805 = vpow2.f32 %v903_v41  ;;  %v1156_v63 = vmul.f32 1.442695, %v1134_v55 }
 0x1a6   : > { %v859_v51 = vpop.xlane.xlu0 %858  ;;  %1807 = vpow2.f32 %v909_v62  ;;  %v1154_v25 = vmul.f32 1.442695, %v1133_v20 }
 0x1a7   : > { %1809 = vpow2.f32 %v905_v2  ;;  %v893_v41 = vsub.f32 %v2125_v34, %v859_v51  ;;  %v856_v47 = vpop.xlane.xlu1 %855 }
 0x1a8   : > { %1811 = vpow2.f32 %v1156_v63  ;;  %v892_v34 = vsub.f32 %v2129_v35, %v856_v47 }
 0x1a9   : > { %v915_v48 = vmul.f32 1.442695, %v893_v41 }
 0x1aa   : > { %v1094_v57 = vpop.xlane.xlu0 %1093  ;;  %v913_v63 = vmul.f32 1.442695, %v892_v34 }
 0x1ab   : > { %v1132_v0 = vsub.f32 %v2142_v44, %v1094_v57 }
 0x1ad   : > { %v2225_v38 = vpop.eup %1801  ;;  %v1152_v9 = vmul.f32 1.442695, %v1132_v0 }
 0x1ae   : > { %1194 = vrot.lane.b32.xlu1 %v2225_v38, %s1931_s19  ;;  %v2231_v43 = vpop.eup %1803  ;;  %v853_v36 = vpop.xlane.xlu0 %852 }
 0x1af   : > { %v941_v49 = vsel %vm838_vm3, %v2231_v43, 0.0  ;;  %v2236_v50 = vpop.eup %1805  ;;  %1813 = vpow2.f32 %v1152_v9  ;;  %v891_v62 = vsub.f32 %v2142_v44, %v853_v36 }
 0x1b0   : > { %v935_v52 = vsel %vm838_vm3, %v2236_v50, 0.0  ;;  %v2250_v4 = vpop.eup %1807  ;;  %1815 = vpow2.f32 %v1158_v19 }
 0x1b1   : > { %v944_v13 = vsel %vm838_vm3, %v2250_v4, 0.0  ;;  %v2260_v14 = vpop.eup %1809  ;;  %1817 = vpow2.f32 %v1154_v25 }
 0x1b2   : > { %v938_v18 = vsel %vm838_vm3, %v2260_v14, 0.0  ;;  %v2274_v24 = vpop.eup %1811  ;;  %v1112_v46 = vpop.xlane.xlu0 %1111  ;;  %1819 = vpow2.f32 %v915_v48 }
 0x1b3   : > { %v1138_v35 = vsub.f32 %v2156_v53, %v1112_v46 }
 0x1b5   : > { %v1164_v19 = vmul.f32 1.442695, %v1138_v35 }
 0x1b6   : > { %v2304_v2 = vpop.xlane.xlu0 %870 }
 0x1b9   : > { %v2282_v29 = vpop.eup %1813 }
 0x1ba   : > { %v2294_v40 = vpop.eup %1815  ;;  %v1106_v55 = vpop.xlane.xlu0 %1105 }
 0x1bb   : > { %v2299_v42 = vpop.eup %1817  ;;  %v1136_v20 = vsub.f32 %v2170_v60, %v1106_v55 }
 0x1bc   : > { %v2309_v51 = vpop.eup %1819 }
 0x1bd   : > { %v953_v0 = vsel %vm838_vm3, %v2309_v51, 0.0  ;;  %v1160_v47 = vmul.f32 1.442695, %v1136_v20 }
 0x1be   : > { %v865_v57 = vpop.xlane.xlu0 %864 }
 0x1c2   : > { %942 = vadd.xlane.f32.xlu0 %v941_v49  ;;  %v911_v49 = vmul.f32 1.442695, %v891_v62  ;;  %v1124_v15 = vpop.xlane.xlu0 %1123 }
 0x1c3   : > { %v1142_v48 = vsub.f32 %v2184_v5, %v1124_v15 }
 0x1c4   : > { %1821 = vpow2.f32 %v911_v49 }
 0x1c5   : > { %1823 = vpow2.f32 %v913_v63  ;;  %v1172_v55 = vmul.f32 1.442695, %v1142_v48 }
 0x1c6   : > { %936 = vadd.xlane.f32.xlu0 %v935_v52  ;;  %v1115_v52 = vpop.xlane.xlu1 %1114  ;;  %1825 = vpow2.f32 %v1164_v19 }
 0x1c7   : > { %v1139_v41 = vsub.f32 %v2145_v45, %v1115_v52  ;;  %1827 = vpow2.f32 %v1160_v47 }
 0x1c8   : > { %v2240_v3 = vpop.f32.mrb[8].mxu0 }
 0x1c9   : > { %v2243_v11 = vpop.f32.mrb[9].mxu0  ;;  %v1166_v46 = vmul.f32 1.442695, %v1139_v41 }
 0x1ca   : > { %v2306_v56 = vpop.xlane.xlu1 %873 }
 0x1cb   : > { %1829 = vpow2.f32 %v1166_v46 }
 0x1cc   : > { %v2245_v59 = vpop.f32.mrb[10].mxu0  ;;  %1831 = vpow2.f32 %v1172_v55  ;;  %v895_v55 = vsub.f32 %v2170_v60, %v865_v57 }
 0x1cd   : > { %v2248_v1 = vpop.f32.mrb[11].mxu0 }
 0x1ce   : > { %v2313_v9 = vpop.eup %1821  ;;  %v1109_v44 = vpop.xlane.xlu1 %1108 }
 0x1cf   : > { %v2321_v36 = vpop.eup %1823  ;;  %v1137_v34 = vsub.f32 %v2159_v54, %v1109_v44 }
 0x1d0   : > { %v2254_v8 = vpop.f32.mrb[12].mxu0  ;;  %v950_v49 = vsel %vm838_vm3, %v2321_v36, 0.0  ;;  %v2332_v19 = vpop.eup %1825 }
 0x1d1   : > { %v2256_v10 = vpop.f32.mrb[13].mxu0  ;;  %v1162_v52 = vmul.f32 1.442695, %v1137_v34  ;;  %v2337_v41 = vpop.eup %1827 }
 0x1d2   : > { %945 = vadd.xlane.f32.xlu1 %v944_v13  ;;  %v947_v13 = vsel %vm838_vm3, %v2313_v9, 0.0  ;;  %v868_v17 = vpop.xlane.xlu1 %867 }
 0x1d3   : > { %1833 = vpow2.f32 %v1162_v52  ;;  %v919_v52 = vmul.f32 1.442695, %v895_v55 }
 0x1d5   : > { %v2263_v16 = vpop.f32.mrb[14].mxu0  ;;  %v2341_v47 = vpop.eup %1829 }
 0x1d6   : > { %v2267_v58 = vpop.f32.mrb[15].mxu0  ;;  %939 = vadd.xlane.f32.xlu1 %v938_v18  ;;  %v2318_v18 = vpop.xlane.xlu0 %882 }
 0x1d7   : > { %v1127_v25 = vpop.xlane.xlu1 %1126  ;;  %v2343_v48 = vpop.eup %1831 }
 0x1d9   : > { %v2270_v22 = vpop.f32.mrb[16].mxu0 }
 0x1da   : > { %v2272_v23 = vpop.f32.mrb[17].mxu0  ;;  %v1118_v62 = vpop.xlane.xlu0 %1117 }
 0x1db   : > { %v2328_v63 = vpop.xlane.xlu1 %885 }
 0x1dc   : > { %1204 = vrot.lane.b32.xlu0 %v2274_v24, %s1931_s19 }
 0x1dd   : > { %v2278_v26 = vpop.f32.mrb[18].mxu0 }
 0x1de   : > { %v2280_v28 = vpop.f32.mrb[19].mxu0 }
 0x1df   : > { %v1121_v35 = vpop.xlane.xlu1 %1120 }
 0x1e0   : > { %1200 = vrot.lane.b32.xlu0 %v2282_v29, %s1931_s19  ;;  %v1141_v20 = vsub.f32 %v2187_v6, %v1121_v35 }
 0x1e1   : > { %v2286_v31 = vpop.f32.mrb[20].mxu0 }
 0x1e2   : > { %2693 = vst [vmem:[#allocation2_spill] sm:$0xff] %v2286_v31  ;;  %v2288_v32 = vpop.f32.mrb[21].mxu0 }
 0x1e3   : > { %v2379_v57 = vpop.xlane.xlu1 %879 }
 0x1e5   : > { %v2290_v37 = vpop.f32.mrb[22].mxu0 }
 0x1e6   : > { %v2292_v39 = vpop.f32.mrb[23].mxu0 }
 0x1e7   : > { %1206 = vrot.lane.b32.xlu1 %v2294_v40, %s1931_s19 }
 0x1eb   : > { %1202 = vrot.lane.b32.xlu1 %v2299_v42, %s1931_s19 }
 0x1ff   : > { %954 = vadd.xlane.f32.xlu0 %v953_v0  ;;  %v1140_v0 = vsub.f32 %v2198_v12, %v1118_v62  ;;  %v2349_v62 = vpop.eup %1833 }
 0x201   : > { %v1168_v15 = vmul.f32 1.442695, %v1140_v0  ;;  %v897_v0 = vsub.f32 %v2156_v53, %v2304_v2 }
 0x203   : > { %948 = vadd.xlane.f32.xlu0 %v947_v13  ;;  %v1143_v13 = vsub.f32 %v2173_v61, %v1127_v25  ;;  %1835 = vpow2.f32 %v1168_v15  ;;  %v1170_v25 = vmul.f32 1.442695, %v1141_v20  ;;  %v894_v15 = vsub.f32 %v2110_v21, %v2252_v7  ;;  %v877_v21 = vpop.xlane.xlu0 %876 }
 0x205   : > { %v1174_v44 = vmul.f32 1.442695, %v1143_v13  ;;  %v923_v13 = vmul.f32 1.442695, %v897_v0  ;;  %v917_v35 = vmul.f32 1.442695, %v894_v15 }
 0x207   : > { %1837 = vpow2.f32 %v1174_v44  ;;  %v896_v44 = vsub.f32 %v2159_v54, %v868_v17 }
 0x208   : > { %1839 = vpow2.f32 %v1170_v25  ;;  %v898_v25 = vsub.f32 %v2145_v45, %v2306_v56 }
 0x209   : > { %1841 = vpow2.f32 %v919_v52  ;;  %v921_v60 = vmul.f32 1.442695, %v896_v44 }
 0x20a   : > { %1843 = vpow2.f32 %v923_v13  ;;  %v925_v55 = vmul.f32 1.442695, %v898_v25 }
 0x20b   : > { %1845 = vpow2.f32 %v917_v35 }
 0x20c   : > { %1847 = vpow2.f32 %v921_v60 }
 0x20d   : > { %1849 = vpow2.f32 %v925_v55 }
 0x20f   : > { %951 = vadd.xlane.f32.xlu1 %v950_v49  ;;  %v2351_v49 = vpop.eup %1835 }
 0x210   : > { %v1197_v7 = vpop.permute.xlu1 %1196 }
 0x211   : > { %v2357_v46 = vpop.eup %1837  ;;  %v1246_v45 = vsel %vm838_vm3, %v1197_v7, 0.0 }
 0x212   : > { %v2361_v34 = vpop.eup %1839 }
 0x213   : > { %v2371_v20 = vpop.eup %1841 }
 0x214   : > { %v959_v53 = vsel %vm838_vm3, %v2371_v20, 0.0  ;;  %v2377_v2 = vpop.eup %1843 }
 0x215   : > { %v965_v54 = vsel %vm838_vm3, %v2377_v2, 0.0  ;;  %v1193_v17 = vpop.permute.xlu0 %1192  ;;  %v2384_v56 = vpop.eup %1845 }
 0x216   : > { %v1240_v52 = vsel %vm838_vm3, %v1193_v17, 0.0  ;;  %v956_v13 = vsel %vm838_vm3, %v2384_v56, 0.0  ;;  %v2389_v15 = vpop.eup %1847 }
 0x217   : > { %v962_v44 = vsel %vm838_vm3, %v2389_v15, 0.0  ;;  %v2393_v25 = vpop.eup %1849 }
 0x218   : > { %v968_v55 = vsel %vm838_vm3, %v2393_v25, 0.0 }
 0x219   : > { %1212 = vrot.lane.b32.xlu0 %v2332_v19, %s1931_s19 }
 0x21d   : > { %1208 = vrot.lane.b32.xlu0 %v2337_v41, %s1931_s19 }
 0x220   : > { %1214 = vrot.lane.b32.xlu1 %v2341_v47, %s1931_s19 }
 0x221   : > { %1220 = vrot.lane.b32.xlu0 %v2343_v48, %s1931_s19 }
 0x224   : > { %1210 = vrot.lane.b32.xlu1 %v2349_v62, %s1931_s19 }
 0x225   : > { %1216 = vrot.lane.b32.xlu0 %v2351_v49, %s1931_s19 }
 0x228   : > { %1222 = vrot.lane.b32.xlu1 %v2357_v46, %s1931_s19 }
 0x22c   : > { %1218 = vrot.lane.b32.xlu1 %v2361_v34, %s1931_s19 }
 0x244   : > { %960 = vadd.xlane.f32.xlu0 %v959_v53  ;;  %v1199_v53 = vpop.permute.xlu1 %1198 }
 0x248   : > { %966 = vadd.xlane.f32.xlu0 %v965_v54 }
 0x24c   : > { %1247 = vadd.xlane.f32.xlu0 %v1246_v45 }
 0x24f   : > { %v943_v0 = vpop.xlane.xlu0 %942 }
 0x250   : > { %1851 = vrcp.f32 %v943_v0  ;;  %1241 = vadd.xlane.f32.xlu0 %v1240_v52  ;;  %957 = vadd.xlane.f32.xlu1 %v956_v13  ;;  %v1195_v0 = vpop.permute.xlu1 %1194  ;;  %v1249_v52 = vsel %vm838_vm3, %v1199_v53, 0.0 }
 0x253   : > { %v937_v35 = vpop.xlane.xlu0 %936 }
 0x254   : > { %1853 = vrcp.f32 %v937_v35  ;;  %963 = vadd.xlane.f32.xlu1 %v962_v44 }
 0x257   : > { %v1205_v60 = vpop.permute.xlu0 %1204 }
 0x258   : > { %v1258_v54 = vsel %vm838_vm3, %v1205_v60, 0.0  ;;  %969 = vadd.xlane.f32.xlu1 %v968_v55  ;;  %v1243_v55 = vsel %vm838_vm3, %v1195_v0, 0.0 }
 0x259   : > { %1259 = vadd.xlane.f32.xlu0 %v1258_v54 }
 0x25a   : > { %v1852_v7 = vpop.eup %1851 }
 0x25b   : > { %v1201_v17 = vpop.permute.xlu0 %1200  ;;  %v1001_v45 = vmul.f32 %v1852_v7, %v2231_v43 }
 0x25c   : > { %v1252_v13 = vsel %vm838_vm3, %v1201_v17, 0.0  ;;  %1250 = vadd.xlane.f32.xlu1 %v1249_v52 }
 0x25d   : > { %1253 = vadd.xlane.f32.xlu0 %v1252_v13  ;;  %v2402_v35 = vmul.f32 %v1001_v45, %v2248_v1 }
 0x25e   : > { %v1854_v44 = vpop.eup %1853 }
 0x25f   : > { %v999_v31 = vmul.f32 %v1854_v44, %v2236_v50  ;;  %v946_v60 = vpop.xlane.xlu1 %945 }
 0x260   : > { %1855 = vrcp.f32 %v946_v60  ;;  %1244 = vadd.xlane.f32.xlu1 %v1243_v55  ;;  %v899_v55 = vsub.f32 %v2198_v12, %v877_v21  ;;  %v900_v12 = vsub.f32 %v2187_v6, %v2379_v57 }
 0x261   : > { %v2407_v43 = vmul.f32 %v999_v31, %v2243_v11 }
 0x263   : > { %v940_v54 = vpop.xlane.xlu1 %939 }
 0x264   : > { %1857 = vrcp.f32 %v940_v54 }
 0x267   : > { %v1207_v53 = vpop.permute.xlu1 %1206 }
 0x268   : > { %v1261_v7 = vsel %vm838_vm3, %v1207_v53, 0.0  ;;  %v901_v53 = vsub.f32 %v2184_v5, %v2318_v18  ;;  %v902_v18 = vsub.f32 %v2173_v61, %v2328_v63 }
 0x269   : > { %1262 = vadd.xlane.f32.xlu1 %v1261_v7 }
 0x26a   : > { %v1856_v17 = vpop.eup %1855  ;;  %v933_v6 = vmul.f32 1.442695, %v902_v18 }
 0x26b   : > { %v1203_v45 = vpop.permute.xlu1 %1202  ;;  %v1002_v52 = vmul.f32 %v1856_v17, %v2250_v4  ;;  %v927_v4 = vmul.f32 1.442695, %v899_v55 }
 0x26c   : > { %v1255_v50 = vsel %vm838_vm3, %v1203_v45, 0.0  ;;  %v931_v45 = vmul.f32 1.442695, %v901_v53 }
 0x26d   : > { %1256 = vadd.xlane.f32.xlu1 %v1255_v50  ;;  %v2413_v0 = vmul.f32 %v2245_v59, %v1002_v52  ;;  %1859 = vpow2.f32 %v927_v4 }
 0x26e   : > { %v1858_v13 = vpop.eup %1857  ;;  %1861 = vpow2.f32 %v931_v45 }
 0x26f   : > { %v1000_v31 = vmul.f32 %v1858_v13, %v2260_v14 }
 0x271   : > { %v2417_v44 = vmul.f32 %v2240_v3, %v1000_v31  ;;  %v929_v31 = vmul.f32 1.442695, %v900_v12 }
 0x277   : > { %v2430_v4 = vpop.eup %1859 }
 0x278   : > { %v2435_v45 = vpop.eup %1861 }
 0x28c   : > { %v955_v60 = vpop.xlane.xlu0 %954 }
 0x290   : > { %v949_v54 = vpop.xlane.xlu0 %948 }
 0x294   : > { %v1213_v7 = vpop.permute.xlu0 %1212 }
 0x295   : > { %v1270_v17 = vsel %vm838_vm3, %v1213_v7, 0.0 }
 0x296   : > { %1271 = vadd.xlane.f32.xlu0 %v1270_v17  ;;  %v971_v17 = vsel %vm838_vm3, %v2430_v4, 0.0 }
 0x298   : > { %v1209_v52 = vpop.permute.xlu0 %1208 }
 0x299   : > { %v1264_v14 = vsel %vm838_vm3, %v1209_v52, 0.0 }
 0x29a   : > { %1265 = vadd.xlane.f32.xlu0 %v1264_v14  ;;  %v977_v14 = vsel %vm838_vm3, %v2435_v45, 0.0 }
 0x29c   : > { %v1221_v50 = vpop.permute.xlu0 %1220  ;;  %v952_v21 = vpop.xlane.xlu1 %951 }
 0x29d   : > { %v1282_v13 = vsel %vm838_vm3, %v1221_v50, 0.0  ;;  %1863 = vrcp.f32 %v952_v21 }
 0x29e   : > { %1283 = vadd.xlane.f32.xlu0 %v1282_v13  ;;  %1865 = vrcp.f32 %v955_v60  ;;  %v1037_v13 = vsel %vm838_vm3, %v2402_v35, 0.0  ;;  %v1040_v35 = vsel %vm838_vm3, %v2413_v0, 0.0 }
 0x29f   : > { %1867 = vpow2.f32 %v929_v31 }
 0x2a0   : > { %v1217_v5 = vpop.permute.xlu0 %1216  ;;  %v1215_v55 = vpop.permute.xlu1 %1214  ;;  %1869 = vrcp.f32 %v949_v54 }
 0x2a1   : > { %v1276_v53 = vsel %vm838_vm3, %v1217_v5, 0.0  ;;  %v1273_v7 = vsel %vm838_vm3, %v1215_v55, 0.0  ;;  %1871 = vpow2.f32 %v933_v6 }
 0x2a2   : > { %1277 = vadd.xlane.f32.xlu0 %v1276_v53  ;;  %1274 = vadd.xlane.f32.xlu1 %v1273_v7 }
 0x2a4   : > { %v1211_v57 = vpop.permute.xlu1 %1210 }
 0x2a5   : > { %v1267_v61 = vsel %vm838_vm3, %v1211_v57, 0.0 }
 0x2a6   : > { %972 = vadd.xlane.f32.xlu0 %v971_v17  ;;  %1268 = vadd.xlane.f32.xlu1 %v1267_v61  ;;  %v1034_v61 = vsel %vm838_vm3, %v2417_v44, 0.0 }
 0x2a7   : > { %v1864_v63 = vpop.eup %1863 }
 0x2a8   : > { %v1223_v52 = vpop.permute.xlu1 %1222  ;;  %v1004_v60 = vmul.f32 %v1864_v63, %v2321_v36  ;;  %v1866_v5 = vpop.eup %1865  ;;  %v1031_v36 = vsel %vm838_vm3, %v2407_v43, 0.0 }
 0x2a9   : > { %v1285_v50 = vsel %vm838_vm3, %v1223_v52, 0.0  ;;  %v2448_v18 = vpop.eup %1867  ;;  %v1005_v31 = vmul.f32 %v1866_v5, %v2309_v51 }
 0x2aa   : > { %978 = vadd.xlane.f32.xlu0 %v977_v14  ;;  %1286 = vadd.xlane.f32.xlu1 %v1285_v50  ;;  %v2443_v12 = vmul.f32 %v2254_v8, %v1004_v60  ;;  %v1870_v55 = vpop.eup %1869  ;;  %v974_v53 = vsel %vm838_vm3, %v2448_v18, 0.0 }
 0x2ab   : > { %v2455_v7 = vpop.eup %1871  ;;  %v1021_v6 = vmul.f32 %v1005_v31, %v2267_v58  ;;  %v1003_v57 = vmul.f32 %v1870_v55, %v2313_v9 }
 0x2ac   : > { %v1219_v21 = vpop.permute.xlu1 %1218  ;;  %v980_v43 = vsel %vm838_vm3, %v2455_v7, 0.0 }
 0x2ad   : > { %v1279_v54 = vsel %vm838_vm3, %v1219_v21, 0.0  ;;  %v1049_v51 = vsel %vm838_vm3, %v1021_v6, 0.0  ;;  %v1019_v17 = vmul.f32 %v1003_v57, %v2256_v10 }
 0x2ae   : > { %1038 = vadd.xlane.f32.xlu0 %v1037_v13  ;;  %1280 = vadd.xlane.f32.xlu1 %v1279_v54 }
 0x2af   : > { %v1043_v0 = vsel %vm838_vm3, %v1019_v17, 0.0 }
 0x2b2   : > { %1032 = vadd.xlane.f32.xlu0 %v1031_v36  ;;  %975 = vadd.xlane.f32.xlu1 %v974_v53 }
 0x2b6   : > { %1041 = vadd.xlane.f32.xlu0 %v1040_v35  ;;  %981 = vadd.xlane.f32.xlu1 %v980_v43 }
 0x2ba   : > { %1050 = vadd.xlane.f32.xlu0 %v1049_v51  ;;  %1035 = vadd.xlane.f32.xlu1 %v1034_v61 }
 0x2be   : > { %1044 = vadd.xlane.f32.xlu0 %v1043_v0 }
 0x2d1   : > { %v961_v63 = vpop.xlane.xlu0 %960 }
 0x2d2   : > { %1873 = vrcp.f32 %v961_v63 }
 0x2d5   : > { %v967_v9 = vpop.xlane.xlu0 %966 }
 0x2d6   : > { %1875 = vrcp.f32 %v967_v9  ;;  %v1046_v9 = vsel %vm838_vm3, %v2443_v12, 0.0 }
 0x2d9   : > { %v1248_v14 = vpop.xlane.xlu0 %1247 }
 0x2dc   : > { %v1874_v52 = vpop.eup %1873 }
 0x2dd   : > { %v1007_v60 = vmul.f32 %v1874_v52, %v2371_v20  ;;  %v958_v50 = vpop.xlane.xlu1 %957  ;;  %v1242_v54 = vpop.xlane.xlu0 %1241 }
 0x2de   : > { %1877 = vrcp.f32 %v958_v50 }
 0x2df   : > { %v1023_v21 = vmul.f32 %v1007_v60, %v2272_v23 }
 0x2e0   : > { %v1876_v13 = vpop.eup %1875 }
 0x2e1   : > { %v1055_v5 = vsel %vm838_vm3, %v1023_v21, 0.0  ;;  %v1009_v44 = vmul.f32 %v1876_v13, %v2377_v2  ;;  %v964_v36 = vpop.xlane.xlu1 %963 }
 0x2e2   : > { %1056 = vadd.xlane.f32.xlu0 %v1055_v5  ;;  %1879 = vrcp.f32 %v964_v36 }
 0x2e3   : > { %v2473_v31 = vmul.f32 %v1009_v44, %v2280_v28  ;;  %1881 = vrcp.f32 %v1242_v54 }
 0x2e5   : > { %v970_v55 = vpop.xlane.xlu1 %969 }
 0x2e6   : > { %v1260_v53 = vpop.xlane.xlu0 %1259  ;;  %1883 = vrcp.f32 %v970_v55 }
 0x2e7   : > { %1885 = vrcp.f32 %v1260_v53 }
 0x2e8   : > { %v1878_v20 = vpop.eup %1877 }
 0x2e9   : > { %v1006_v6 = vmul.f32 %v1878_v20, %v2384_v56  ;;  %v1251_v2 = vpop.xlane.xlu1 %1250 }
 0x2ea   : > { %v1254_v35 = vpop.xlane.xlu0 %1253 }
 0x2eb   : > { %v1022_v57 = vmul.f32 %v2263_v16, %v1006_v6  ;;  %1887 = vrcp.f32 %v1254_v35 }
 0x2ec   : > { %v1880_v43 = vpop.eup %1879  ;;  %1889 = vrcp.f32 %v1248_v14 }
 0x2ed   : > { %v1052_v51 = vsel %vm838_vm3, %v1022_v57, 0.0  ;;  %v1008_v17 = vmul.f32 %v1880_v43, %v2389_v15  ;;  %v1882_v61 = vpop.eup %1881  ;;  %v1245_v50 = vpop.xlane.xlu1 %1244  ;;  %1891 = vrcp.f32 %v1251_v2 }
 0x2ee   : > { %1053 = vadd.xlane.f32.xlu1 %v1052_v51  ;;  %v1304_v56 = vmul.f32 %v1882_v61, %v2218_v27  ;;  %1893 = vrcp.f32 %v1245_v50 }
 0x2ef   : > { %v2480_v0 = vmul.f32 %v2270_v22, %v1008_v17 }
 0x2f0   : > { %v1884_v63 = vpop.eup %1883  ;;  %v1320_v15 = vmul.f32 %v1304_v56, %v2243_v11 }
 0x2f1   : > { %v1010_v52 = vmul.f32 %v1884_v63, %v2393_v25  ;;  %v1886_v60 = vpop.eup %1885 }
 0x2f2   : > { %1047 = vadd.xlane.f32.xlu1 %v1046_v9  ;;  %v1310_v13 = vmul.f32 %v1886_v60, %v2274_v24 }
 0x2f3   : > { %v2487_v21 = vmul.f32 %v2278_v26, %v1010_v52 }
 0x2f4   : > { %v1326_v27 = vmul.f32 %v1310_v13, %v2267_v58 }
 0x2f5   : > { %v1888_v5 = vpop.eup %1887 }
 0x2f6   : > { %v1263_v14 = vpop.xlane.xlu1 %1262  ;;  %v1308_v25 = vmul.f32 %v1888_v5, %v2282_v29  ;;  %v1890_v12 = vpop.eup %1889 }
 0x2f7   : > { %1895 = vrcp.f32 %v1263_v14  ;;  %v1306_v11 = vmul.f32 %v1890_v12, %v2211_v30  ;;  %v1892_v36 = vpop.eup %1891 }
 0x2f8   : > { %1352 = vrot.lane.b32.xlu0 %v1320_v15, %s1931_s19  ;;  %v1324_v54 = vmul.f32 %v1308_v25, %v2256_v10  ;;  %v1307_v55 = vmul.f32 %v1892_v36, %v2216_v33  ;;  %v1894_v58 = vpop.eup %1893  ;;  %v2694_v25 = vld [vmem:[#allocation2_spill] sm:$0xff] }
 0x2f9   : > { %v1322_v24 = vmul.f32 %v1306_v11, %v2248_v1  ;;  %v1305_v53 = vmul.f32 %v1894_v58, %v2225_v38  ;;  %v1061_v11 = vsel %vm838_vm3, %v2473_v31, 0.0 }
 0x2fa   : > { %v1257_v44 = vpop.xlane.xlu1 %1256  ;;  %v1323_v29 = vmul.f32 %v2245_v59, %v1307_v55 }
 0x2fb   : > { %1897 = vrcp.f32 %v1257_v44  ;;  %v1321_v30 = vmul.f32 %v2240_v3, %v1305_v53 }
 0x2fc   : > { %1364 = vrot.lane.b32.xlu0 %v1326_v27, %s1931_s19 }
 0x300   : > { %1360 = vrot.lane.b32.xlu0 %v1324_v54, %s1931_s19 }
 0x301   : > { %v1896_v20 = vpop.eup %1895 }
 0x302   : > { %v1311_v10 = vmul.f32 %v1896_v20, %v2294_v40 }
 0x303   : > { %1356 = vrot.lane.b32.xlu1 %v1322_v24, %s1931_s19 }
 0x304   : > { %v1327_v1 = vmul.f32 %v2263_v16, %v1311_v10  ;;  %v1064_v10 = vsel %vm838_vm3, %v2487_v21, 0.0 }
 0x305   : > { %v1898_v35 = vpop.eup %1897 }
 0x306   : > { %v1309_v33 = vmul.f32 %v1898_v35, %v2299_v42 }
 0x307   : > { %1358 = vrot.lane.b32.xlu1 %v1323_v29, %s1931_s19 }
 0x308   : > { %v1325_v59 = vmul.f32 %v2254_v8, %v1309_v33 }
 0x30b   : > { %1354 = vrot.lane.b32.xlu1 %v1321_v30, %s1931_s19 }
 0x30f   : > { %1366 = vrot.lane.b32.xlu1 %v1327_v1, %s1931_s19 }
 0x313   : > { %1362 = vrot.lane.b32.xlu1 %v1325_v59, %s1931_s19 }
 0x323   : > { %v1272_v38 = vpop.xlane.xlu0 %1271 }
 0x324   : > { %1899 = vrcp.f32 %v1272_v38 }
 0x327   : > { %v1266_v6 = vpop.xlane.xlu0 %1265 }
 0x328   : > { %1901 = vrcp.f32 %v1266_v6 }
 0x32b   : > { %v1284_v3 = vpop.xlane.xlu0 %1283 }
 0x32c   : > { %1903 = vrcp.f32 %v1284_v3 }
 0x32e   : > { %v1900_v40 = vpop.eup %1899 }
 0x32f   : > { %v1278_v57 = vpop.xlane.xlu0 %1277  ;;  %v1314_v43 = vmul.f32 %v1900_v40, %v2332_v19  ;;  %v1275_v16 = vpop.xlane.xlu1 %1274 }
 0x330   : > { %1905 = vrcp.f32 %v1278_v57 }
 0x331   : > { %1907 = vrcp.f32 %v1275_v16  ;;  %v1330_v42 = vmul.f32 %v1314_v43, %v2280_v28 }
 0x332   : > { %v1902_v2 = vpop.eup %1901 }
 0x333   : > { %1372 = vrot.lane.b32.xlu0 %v1330_v42, %s1931_s19  ;;  %v1312_v8 = vmul.f32 %v1902_v2, %v2337_v41  ;;  %v1269_v51 = vpop.xlane.xlu1 %1268  ;;  %v973_v27 = vpop.xlane.xlu0 %972 }
 0x334   : > { %1909 = vrcp.f32 %v1269_v51 }
 0x335   : > { %v1328_v17 = vmul.f32 %v1312_v8, %v2272_v23 }
 0x336   : > { %v1904_v61 = vpop.eup %1903 }
 0x337   : > { %1368 = vrot.lane.b32.xlu0 %v1328_v17, %s1931_s19  ;;  %v1318_v63 = vmul.f32 %v1904_v61, %v2343_v48  ;;  %v1287_v19 = vpop.xlane.xlu1 %1286 }
 0x338   : > { %1911 = vrcp.f32 %v1287_v19 }
 0x339   : > { %v1334_v9 = vmul.f32 %v1318_v63, %v2292_v39 }
 0x33a   : > { %v1906_v56 = vpop.eup %1905 }
 0x33b   : > { %v1908_v28 = vpop.eup %1907  ;;  %1380 = vrot.lane.b32.xlu0 %v1334_v9, %s1931_s19  ;;  %v1316_v52 = vmul.f32 %v1906_v56, %v2351_v49  ;;  %v1281_v41 = vpop.xlane.xlu1 %1280 }
 0x33c   : > { %v1315_v60 = vmul.f32 %v1908_v28, %v2341_v47  ;;  %1913 = vrcp.f32 %v1281_v41 }
 0x33d   : > { %v1332_v23 = vmul.f32 %v1316_v52, %v2288_v32  ;;  %1915 = vrcp.f32 %v973_v27 }
 0x33e   : > { %v1331_v50 = vmul.f32 %v2278_v26, %v1315_v60  ;;  %v1910_v15 = vpop.eup %1909 }
 0x33f   : > { %1376 = vrot.lane.b32.xlu0 %v1332_v23, %s1931_s19  ;;  %v1313_v48 = vmul.f32 %v1910_v15, %v2349_v62  ;;  %v979_v62 = vpop.xlane.xlu0 %978 }
 0x340   : > { %1374 = vrot.lane.b32.xlu1 %v1331_v50, %s1931_s19  ;;  %1917 = vrcp.f32 %v979_v62 }
 0x341   : > { %v1329_v13 = vmul.f32 %v2270_v22, %v1313_v48 }
 0x342   : > { %v1912_v5 = vpop.eup %1911 }
 0x343   : > { %v1319_v49 = vmul.f32 %v1912_v5, %v2357_v46  ;;  %v976_v46 = vpop.xlane.xlu1 %975 }
 0x344   : > { %1370 = vrot.lane.b32.xlu1 %v1329_v13, %s1931_s19  ;;  %1919 = vrcp.f32 %v976_v46 }
 0x345   : > { %v1335_v47 = vmul.f32 %v2290_v37, %v1319_v49 }
 0x346   : > { %v1914_v14 = vpop.eup %1913 }
 0x347   : > { %v1317_v26 = vmul.f32 %v1914_v14, %v2361_v34  ;;  %v1916_v22 = vpop.eup %1915  ;;  %v2541_v34 = vpop.xlane.xlu0 %1038 }
 0x348   : > { %1382 = vrot.lane.b32.xlu1 %v1335_v47, %s1931_s19  ;;  %v1011_v44 = vmul.f32 %v1916_v22, %v2430_v4  ;;  %v982_v29 = vpop.xlane.xlu1 %981 }
 0x349   : > { %v1333_v12 = vmul.f32 %v2694_v25, %v1317_v26  ;;  %1921 = vrcp.f32 %v982_v29 }
 0x34a   : > { %v1918_v54 = vpop.eup %1917  ;;  %v1027_v36 = vmul.f32 %v1011_v44, %v2288_v32 }
 0x34b   : > { %v1013_v24 = vmul.f32 %v1918_v54, %v2435_v45  ;;  %v2546_v53 = vpop.xlane.xlu0 %1032  ;;  %v1058_v45 = vsel %vm838_vm3, %v2480_v0, 0.0 }
 0x34c   : > { %1378 = vrot.lane.b32.xlu1 %v1333_v12, %s1931_s19  ;;  %v1067_v55 = vsel %vm838_vm3, %v1027_v36, 0.0  ;;  %v2561_v38 = vpop.xlane.xlu1 %1035 }
 0x34d   : > { %v1029_v58 = vmul.f32 %v1013_v24, %v2292_v39 }
 0x34e   : > { %v1920_v31 = vpop.eup %1919 }
 0x34f   : > { %v1073_v4 = vsel %vm838_vm3, %v1029_v58, 0.0  ;;  %v2548_v32 = vpop.xlane.xlu0 %1041  ;;  %v1012_v20 = vmul.f32 %v1920_v31, %v2448_v18 }
 0x351   : > { %v1028_v35 = vmul.f32 %v2694_v25, %v1012_v20 }
 0x353   : > { %v1922_v30 = vpop.eup %1921  ;;  %v2553_v39 = vpop.xlane.xlu0 %1050  ;;  %v1070_v33 = vsel %vm838_vm3, %v1028_v35, 0.0 }
 0x354   : > { %v1014_v1 = vmul.f32 %v1922_v30, %v2455_v7 }
 0x356   : > { %v1030_v59 = vmul.f32 %v2290_v37, %v1014_v1 }
 0x357   : > { %v2563_v0 = vpop.xlane.xlu0 %1044 }
 0x358   : > { %v1076_v18 = vsel %vm838_vm3, %v1030_v59, 0.0 }
 0x35e   : > { %1062 = vadd.xlane.f32.xlu0 %v1061_v11  ;;  %v2596_v11 = vld [vmem:[%s2690_s6] ss:$0 sm:$0xff] }
 0x362   : > { %1068 = vadd.xlane.f32.xlu0 %v1067_v55 }
 0x366   : > { %1074 = vadd.xlane.f32.xlu0 %v1073_v4 }
 0x36f   : > { %v2566_v6 = vpop.xlane.xlu0 %1056 }
 0x370   : > { %1059 = vadd.xlane.f32.xlu1 %v1058_v45 }
 0x373   : > { %v1353_v7 = vpop.permute.xlu0 %1352 }
 0x374   : > { %1065 = vadd.xlane.f32.xlu1 %v1064_v10  ;;  %v1400_v16 = vsel %vm838_vm3, %v1353_v7, 0.0 }
 0x377   : > { %v1365_v37 = vpop.permute.xlu0 %1364 }
 0x378   : > { %1071 = vadd.xlane.f32.xlu1 %v1070_v33  ;;  %v1418_v8 = vsel %vm838_vm3, %v1365_v37, 0.0 }
 0x37b   : > { %v2568_v3 = vpop.xlane.xlu1 %1053  ;;  %v1361_v17 = vpop.permute.xlu0 %1360 }
 0x37c   : > { %1077 = vadd.xlane.f32.xlu1 %v1076_v18  ;;  %v1412_v63 = vsel %vm838_vm3, %v1361_v17, 0.0 }
 0x37f   : > { %v2570_v21 = vpop.xlane.xlu1 %1047 }
 0x383   : > { %v1357_v40 = vpop.permute.xlu1 %1356 }
 0x384   : > { %v1406_v57 = vsel %vm838_vm3, %v1357_v40, 0.0 }
 0x385   : > { %1407 = vadd.xlane.f32.xlu0 %v1406_v57 }
 0x387   : > { %v1359_v43 = vpop.permute.xlu1 %1358 }
 0x388   : > { %v1409_v42 = vsel %vm838_vm3, %v1359_v43, 0.0 }
 0x389   : > { %1410 = vadd.xlane.f32.xlu1 %v1409_v42  ;;  %1401 = vadd.xlane.f32.xlu0 %v1400_v16 }
 0x38b   : > { %v1355_v2 = vpop.permute.xlu1 %1354 }
 0x38c   : > { %v1403_v51 = vsel %vm838_vm3, %v1355_v2, 0.0 }
 0x38d   : > { %1404 = vadd.xlane.f32.xlu1 %v1403_v51  ;;  %1419 = vadd.xlane.f32.xlu0 %v1418_v8 }
 0x38f   : > { %v1367_v61 = vpop.permute.xlu1 %1366 }
 0x390   : > { %v1421_v19 = vsel %vm838_vm3, %v1367_v61, 0.0 }
 0x391   : > { %1422 = vadd.xlane.f32.xlu1 %v1421_v19  ;;  %1413 = vadd.xlane.f32.xlu0 %v1412_v63 }
 0x393   : > { %v1363_v9 = vpop.permute.xlu1 %1362 }
 0x394   : > { %v1415_v56 = vsel %vm838_vm3, %v1363_v9, 0.0 }
 0x395   : > { %1416 = vadd.xlane.f32.xlu1 %v1415_v56 }
 0x3a5   : > { %v1373_v28 = vpop.permute.xlu0 %1372 }
 0x3a6   : > { %v1430_v52 = vsel %vm838_vm3, %v1373_v28, 0.0 }
 0x3a7   : > { %1431 = vadd.xlane.f32.xlu0 %v1430_v52 }
 0x3a9   : > { %v1369_v41 = vpop.permute.xlu0 %1368 }
 0x3aa   : > { %v1424_v60 = vsel %vm838_vm3, %v1369_v41, 0.0 }
 0x3ab   : > { %1425 = vadd.xlane.f32.xlu0 %v1424_v60 }
 0x3ad   : > { %v1381_v23 = vpop.permute.xlu0 %1380 }
 0x3ae   : > { %v1442_v5 = vsel %vm838_vm3, %v1381_v23, 0.0 }
 0x3b1   : > { %v1377_v50 = vpop.permute.xlu0 %1376 }
 0x3b2   : > { %v1436_v15 = vsel %vm838_vm3, %v1377_v50, 0.0  ;;  %v1375_v48 = vpop.permute.xlu1 %1374 }
 0x3b3   : > { %v1433_v13 = vsel %vm838_vm3, %v1375_v48, 0.0  ;;  %1437 = vadd.xlane.f32.xlu0 %v1436_v15 }
 0x3b4   : > { %1434 = vadd.xlane.f32.xlu1 %v1433_v13 }
 0x3b6   : > { %v1371_v49 = vpop.permute.xlu1 %1370 }
 0x3b7   : > { %v1427_v47 = vsel %vm838_vm3, %v1371_v49, 0.0  ;;  %1443 = vadd.xlane.f32.xlu0 %v1442_v5 }
 0x3b8   : > { %1428 = vadd.xlane.f32.xlu1 %v1427_v47 }
 0x3ba   : > { %v1383_v14 = vpop.permute.xlu1 %1382 }
 0x3bb   : > { %v1445_v25 = vsel %vm838_vm3, %v1383_v14, 0.0 }
 0x3be   : > { %v1379_v27 = vpop.permute.xlu1 %1378 }
 0x3bf   : > { %v1439_v26 = vsel %vm838_vm3, %v1379_v27, 0.0 }
 0x3c0   : > { %1440 = vadd.xlane.f32.xlu1 %v1439_v26 }
 0x3c4   : > { %1446 = vadd.xlane.f32.xlu1 %v1445_v25 }
 0x3eb   : > { %v1063_v62 = vpop.xlane.xlu0 %1062 }
 0x3ef   : > { %v1069_v44 = vpop.xlane.xlu0 %1068 }
 0x3f3   : > { %v1075_v46 = vpop.xlane.xlu0 %1074 }
 0x3fd   : > { %v2588_v12 = vpop.xlane.xlu1 %1059 }
 0x401   : > { %v1066_v22 = vpop.xlane.xlu1 %1065 }
 0x405   : > { %v2590_v54 = vpop.xlane.xlu1 %1071 }
 0x409   : > { %v2598_v36 = vpop.xlane.xlu1 %1077 }
 0x412   : > { %v1408_v24 = vpop.xlane.xlu0 %1407 }
 0x413   : > { %v1451_v55 = vsel %vm1448_vm4, %v2541_v34, %v1408_v24 }
 0x414   : > { %v1474_v58 = vadd.f32 %v2596_v11, %v1451_v55 }
 0x416   : > { %1490 = vst.msk [vmem:[%s2603_s26 + $0x10] sm:$0xff] %vm838_vm3, %v1474_v58  ;;  %v1411_v29 = vpop.xlane.xlu1 %1410  ;;  %v1402_v4 = vpop.xlane.xlu0 %1401 }
 0x417   : > { %v1452_v31 = vsel %vm1448_vm4, %v2548_v32, %v1411_v29  ;;  %v1449_v45 = vsel %vm1448_vm4, %v2546_v53, %v1402_v4 }
 0x418   : > { %v1475_v20 = vadd.f32 %v2596_v11, %v1452_v31  ;;  %v1472_v30 = vadd.f32 %v2596_v11, %v1449_v45 }
 0x41a   : > { %1491 = vst.msk [vmem:[%s2603_s26 + $0x18] sm:$0xff] %vm838_vm3, %v1475_v20  ;;  %1488 = vst.msk [vmem:[%s2603_s26] sm:$0xff] %vm838_vm3, %v1472_v30  ;;  %v1405_v34 = vpop.xlane.xlu1 %1404  ;;  %v1420_v10 = vpop.xlane.xlu0 %1419 }
 0x41b   : > { %v1450_v35 = vsel %vm1448_vm4, %v2561_v38, %v1405_v34  ;;  %v1455_v32 = vsel %vm1448_vm4, %v2553_v39, %v1420_v10 }
 0x41c   : > { %v1473_v53 = vadd.f32 %v2596_v11, %v1450_v35  ;;  %v1478_v1 = vadd.f32 %v2596_v11, %v1455_v32 }
 0x41e   : > { %1489 = vst.msk [vmem:[%s2603_s26 + $0x8] sm:$0xff] %vm838_vm3, %v1473_v53  ;;  %1494 = vst.msk [vmem:[%s2603_s26 + $0x30] sm:$0xff] %vm838_vm3, %v1478_v1  ;;  %v1423_v33 = vpop.xlane.xlu1 %1422  ;;  %v1414_v59 = vpop.xlane.xlu0 %1413 }
 0x41f   : > { %v1456_v18 = vsel %vm1448_vm4, %v2568_v3, %v1423_v33  ;;  %v1453_v38 = vsel %vm1448_vm4, %v2563_v0, %v1414_v59 }
 0x420   : > { %v1479_v39 = vadd.f32 %v2596_v11, %v1456_v18  ;;  %v1476_v7 = vadd.f32 %v2596_v11, %v1453_v38 }
 0x422   : > { %1495 = vst.msk [vmem:[%s2603_s26 + $0x38] sm:$0xff] %vm838_vm3, %v1479_v39  ;;  %1492 = vst.msk [vmem:[%s2603_s26 + $0x20] sm:$0xff] %vm838_vm3, %v1476_v7  ;;  %v1417_v40 = vpop.xlane.xlu1 %1416 }
 0x423   : > { %v1454_v57 = vsel %vm1448_vm4, %v2570_v21, %v1417_v40 }
 0x424   : > { %v1477_v37 = vadd.f32 %v2596_v11, %v1454_v57 }
 0x426   : > { %1493 = vst.msk [vmem:[%s2603_s26 + $0x28] sm:$0xff] %vm838_vm3, %v1477_v37 }
 0x434   : > { %v1432_v3 = vpop.xlane.xlu0 %1431 }
 0x435   : > { %v1459_v0 = vsel %vm1448_vm4, %v1063_v62, %v1432_v3 }
 0x436   : > { %v1482_v43 = vadd.f32 %v2596_v11, %v1459_v0 }
 0x438   : > { %1498 = vst.msk [vmem:[%s2603_s26 + $0x50] sm:$0xff] %vm838_vm3, %v1482_v43  ;;  %v1426_v16 = vpop.xlane.xlu0 %1425 }
 0x439   : > { %v1457_v42 = vsel %vm1448_vm4, %v2566_v6, %v1426_v16 }
 0x43a   : > { %v1480_v2 = vadd.f32 %v2596_v11, %v1457_v42 }
 0x43c   : > { %1496 = vst.msk [vmem:[%s2603_s26 + $0x40] sm:$0xff] %vm838_vm3, %v1480_v2 }
 0x440   : > { %v1438_v21 = vpop.xlane.xlu0 %1437 }
 0x441   : > { %v1461_v8 = vsel %vm1448_vm4, %v1069_v44, %v1438_v21  ;;  %v1435_v51 = vpop.xlane.xlu1 %1434 }
 0x442   : > { %v1484_v17 = vadd.f32 %v2596_v11, %v1461_v8  ;;  %v1460_v61 = vsel %vm1448_vm4, %v1066_v22, %v1435_v51 }
 0x443   : > { %v1483_v63 = vadd.f32 %v2596_v11, %v1460_v61 }
 0x444   : > { %1500 = vst.msk [vmem:[%s2603_s26 + $0x60] sm:$0xff] %vm838_vm3, %v1484_v17  ;;  %v1444_v6 = vpop.xlane.xlu0 %1443 }
 0x445   : > { %1499 = vst.msk [vmem:[%s2603_s26 + $0x58] sm:$0xff] %vm838_vm3, %v1483_v63  ;;  %v1463_v19 = vsel %vm1448_vm4, %v1075_v46, %v1444_v6  ;;  %v1429_v9 = vpop.xlane.xlu1 %1428 }
 0x446   : > { %v1486_v56 = vadd.f32 %v2596_v11, %v1463_v19  ;;  %v1458_v28 = vsel %vm1448_vm4, %v2588_v12, %v1429_v9 }
 0x447   : > { %v1481_v52 = vadd.f32 %v2596_v11, %v1458_v28 }
 0x448   : > { %1502 = vst.msk [vmem:[%s2603_s26 + $0x70] sm:$0xff] %vm838_vm3, %v1486_v56 }
 0x449   : > { %1497 = vst.msk [vmem:[%s2603_s26 + $0x48] sm:$0xff] %vm838_vm3, %v1481_v52 }
 0x44d   : > { %v1441_v41 = vpop.xlane.xlu1 %1440 }
 0x44e   : > { %v1462_v60 = vsel %vm1448_vm4, %v2590_v54, %v1441_v41 }
 0x44f   : > { %v1485_v23 = vadd.f32 %v2596_v11, %v1462_v60 }
 0x451   : > { %1501 = vst.msk [vmem:[%s2603_s26 + $0x68] sm:$0xff] %vm838_vm3, %v1485_v23  ;;  %v1447_v50 = vpop.xlane.xlu1 %1446 }
 0x452   : > { %v1464_v15 = vsel %vm1448_vm4, %v2598_v36, %v1447_v50 }
 0x453   : > { %v1487_v48 = vadd.f32 %v2596_v11, %v1464_v15 }
 0x455   : > { %1503 = vst.msk [vmem:[%s2603_s26 + $0x78] sm:$0xff] %vm838_vm3, %v1487_v48 }
 0x456 PF: > { %s17_s24 = sadd.s32 1, %s1929_s24  }
 0x457   : > { %p14_p4 = scmp.ge.s32.totalorder %s17_s24, 6  }
 0x459   :  { %16 = sbr.rel (!%p14_p4) target bundleno = 1 (0x1), region = 78 }

</bundles_post_ra>
